<compile_context>
chip_gen: v6e
topology: v6e:2x2x1
jax: 0.10.0
libtpu: 0.0.40
codegen_flags: <defaults>
</compile_context>

<pallas_src>
import functools

import jax
import jax.numpy as jnp
from jax import lax
from jax.experimental import pallas as pl
from jax.experimental.pallas import tpu as pltpu


# ------------------------------- helpers -------------------------------------

def _round_up(x, m):
    return ((x + m - 1) // m) * m


def _pick_tile(n, requested, base, min_tile):
    """Pick (tile, padded_n) for an axis of size n.

    Prefers the largest multiple of `base` <= requested that divides
    round_up(n, base) exactly (zero padded compute).  Falls back to tail
    padding with the requested tile when the exact divisor would be < min_tile.
    """
    n_base = _round_up(max(n, 1), base)
    cap = min(_round_up(max(requested, base), base), n_base)
    best = base
    t = base
    while t <= cap:
        if n_base % t == 0:
            best = t
        t += base
    if best >= min(min_tile, n_base):
        return best, n_base
    return cap, _round_up(n_base, cap)


def _vmem_limit(*block_bytes):
    # Double-buffered blocks + slack, clamped to a budget that also fits v7x.
    total = 2 * sum(block_bytes) + (4 << 20)
    return int(min(64 << 20, max(32 << 20, total)))


# ----------------------- fused LayerNorm + Linear kernel ----------------------

def _prenorm_linear_kernel(x_ref, g_ref, b_ref, w_ref, wb_ref, o_ref, y_ref,
                           *, eps):
    # x_ref: (TM, D); g_ref/b_ref: (1, D); w_ref: (D, TN); wb_ref: (1, TN)
    # y_ref: VMEM scratch (TM, D) f32 — LN output, computed once per row tile.
    @pl.when(pl.program_id(1) == 0)
    def _():
        x = x_ref[...].astype(jnp.float32)
        mean = jnp.mean(x, axis=-1, keepdims=True)          # XLU reduce
        xc = x - mean
        var = jnp.mean(xc * xc, axis=-1, keepdims=True)
        inv = lax.rsqrt(var + eps)                          # EUP slot
        y_ref[...] = (xc * inv) * g_ref[...].astype(jnp.float32) \
            + b_ref[...].astype(jnp.float32)

    acc = jnp.dot(y_ref[...].astype(w_ref.dtype), w_ref[...],   # MXU, f32 acc
                  preferred_element_type=jnp.float32)
    o_ref[...] = (acc + wb_ref[...].astype(jnp.float32)).astype(o_ref.dtype)


def prenorm_linear_pallas(x, gamma, beta, w, bias, *, eps=1e-5,
                          tile_rows=256, tile_n=512):
    """Fused LayerNorm(dim) -> Linear(dim, h).  LN output never hits HBM."""
    orig_shape = x.shape
    d = orig_shape[-1]
    h = w.shape[-1]
    x2 = x.reshape(-1, d)
    n = x2.shape[0]

    # Row tiling (multiple of 8) + optional zero-pad tail rows.
    tile_rows, n_pad = _pick_tile(n, tile_rows, 8, 64)
    if n_pad != n:
        x2 = jnp.pad(x2, ((0, n_pad - n), (0, 0)))

    # N tiling (lane-dense, multiple of 128) + optional zero-pad weight columns.
    tile_n, h_pad = _pick_tile(h, tile_n, 128, 128)
    w2 = w
    bias2 = bias.reshape(1, h)
    if h_pad != h:
        w2 = jnp.pad(w, ((0, 0), (0, h_pad - h)))
        bias2 = jnp.pad(bias2, ((0, 0), (0, h_pad - h)))

    grid = (n_pad // tile_rows, h_pad // tile_n)
    vmem = _vmem_limit(x2.dtype.itemsize * tile_rows * d,
                       w2.dtype.itemsize * d * tile_n,
                       x2.dtype.itemsize * tile_rows * tile_n,
                       4 * tile_rows * d,      # f32 LN scratch
                       4 * 2 * d, 4 * tile_n)

    out = pl.pallas_call(
        functools.partial(_prenorm_linear_kernel, eps=eps),
        out_shape=jax.ShapeDtypeStruct((n_pad, h_pad), x.dtype),
        grid_spec=pltpu.PrefetchScalarGridSpec(
            num_scalar_prefetch=0,
            grid=grid,
            in_specs=[
                pl.BlockSpec((tile_rows, d), lambda i, j: (i, 0)),
                pl.BlockSpec((1, d), lambda i, j: (0, 0)),
                pl.BlockSpec((1, d), lambda i, j: (0, 0)),
                pl.BlockSpec((d, tile_n), lambda i, j: (0, j)),
                pl.BlockSpec((1, tile_n), lambda i, j: (0, j)),
            ],
            out_specs=pl.BlockSpec((tile_rows, tile_n), lambda i, j: (i, j)),
            scratch_shapes=[pltpu.VMEM((tile_rows, d), jnp.float32)],
        ),
        compiler_params=pltpu.CompilerParams(
            dimension_semantics=("parallel", "arbitrary"),
            vmem_limit_bytes=vmem),
    )(x2, gamma.reshape(1, d), beta.reshape(1, d), w2, bias2)

    return out[:n, :h].reshape(orig_shape[:-1] + (h,))


# ---------------------- standalone LayerNorm (generic fn) ---------------------

def _layernorm_kernel(x_ref, g_ref, b_ref, o_ref, *, eps):
    x = x_ref[...].astype(jnp.float32)
    mean = jnp.mean(x, axis=-1, keepdims=True)
    xc = x - mean
    var = jnp.mean(xc * xc, axis=-1, keepdims=True)
    y = xc * lax.rsqrt(var + eps)
    y = y * g_ref[...].astype(jnp.float32) + b_ref[...].astype(jnp.float32)
    o_ref[...] = y.astype(o_ref.dtype)


def layernorm_pallas(x, gamma, beta, *, eps=1e-5, tile_rows=256):
    orig_shape = x.shape
    d = orig_shape[-1]
    x2 = x.reshape(-1, d)
    n = x2.shape[0]

    tile_rows, n_pad = _pick_tile(n, tile_rows, 8, 64)
    if n_pad != n:
        x2 = jnp.pad(x2, ((0, n_pad - n), (0, 0)))

    vmem = _vmem_limit(x2.dtype.itemsize * tile_rows * d,
                       x2.dtype.itemsize * tile_rows * d, 4 * 2 * d)

    out = pl.pallas_call(
        functools.partial(_layernorm_kernel, eps=eps),
        out_shape=jax.ShapeDtypeStruct((n_pad, d), x.dtype),
        grid_spec=pltpu.PrefetchScalarGridSpec(
            num_scalar_prefetch=0,
            grid=(n_pad // tile_rows,),
            in_specs=[
                pl.BlockSpec((tile_rows, d), lambda i: (i, 0)),
                pl.BlockSpec((1, d), lambda i: (0, 0)),
                pl.BlockSpec((1, d), lambda i: (0, 0)),
            ],
            out_specs=pl.BlockSpec((tile_rows, d), lambda i: (i, 0)),
        ),
        compiler_params=pltpu.CompilerParams(
            dimension_semantics=("parallel",),
            vmem_limit_bytes=vmem),
    )(x2, gamma.reshape(1, d), beta.reshape(1, d))
    return out[:n].reshape(orig_shape)


# ----------------------- standalone Linear (inner fn) -------------------------

def _linear_kernel(x_ref, w_ref, b_ref, o_ref):
    acc = jnp.dot(x_ref[...].astype(w_ref.dtype), w_ref[...],
                  preferred_element_type=jnp.float32)
    o_ref[...] = (acc + b_ref[...].astype(jnp.float32)).astype(o_ref.dtype)


def linear_pallas(x, w, b, *, tile_rows=256, tile_n=512):
    orig_shape = x.shape
    d = orig_shape[-1]
    h = w.shape[-1]
    x2 = x.reshape(-1, d)
    n = x2.shape[0]

    tile_rows, n_pad = _pick_tile(n, tile_rows, 8, 64)
    if n_pad != n:
        x2 = jnp.pad(x2, ((0, n_pad - n), (0, 0)))

    tile_n, h_pad = _pick_tile(h, tile_n, 128, 128)
    w2 = w
    b2 = b.reshape(1, h)
    if h_pad != h:
        w2 = jnp.pad(w, ((0, 0), (0, h_pad - h)))
        b2 = jnp.pad(b2, ((0, 0), (0, h_pad - h)))

    grid = (n_pad // tile_rows, h_pad // tile_n)
    vmem = _vmem_limit(x2.dtype.itemsize * tile_rows * d,
                       w2.dtype.itemsize * d * tile_n,
                       x2.dtype.itemsize * tile_rows * tile_n, 4 * tile_n)

    out = pl.pallas_call(
        _linear_kernel,
        out_shape=jax.ShapeDtypeStruct((n_pad, h_pad), x.dtype),
        grid_spec=pltpu.PrefetchScalarGridSpec(
            num_scalar_prefetch=0,
            grid=grid,
            in_specs=[
                pl.BlockSpec((tile_rows, d), lambda i, j: (i, 0)),
                pl.BlockSpec((d, tile_n), lambda i, j: (0, j)),
                pl.BlockSpec((1, tile_n), lambda i, j: (0, j)),
            ],
            out_specs=pl.BlockSpec((tile_rows, tile_n), lambda i, j: (i, j)),
        ),
        compiler_params=pltpu.CompilerParams(
            dimension_semantics=("parallel", "parallel"),
            vmem_limit_bytes=vmem),
    )(x2, w2, b2)
    return out[:n, :h].reshape(orig_shape[:-1] + (h,))


# --------------------------------- modules -----------------------------------

class Linear:
    """Inner `fn` (nn.Linear equivalent) with weights in JAX arrays."""

    def __init__(self, w, b):
        self.w = w
        self.b = b

    def __call__(self, y):
        return linear_pallas(y, self.w, self.b)


class PreNorm:
    """JAX/Pallas equivalent of the PyTorch PreNorm module."""

    def __init__(self, dim, fn, *, dtype=jnp.float32):
        # nn.LayerNorm(dim) default init: weight=1, bias=0, eps=1e-5
        self.gamma = jnp.ones((dim,), dtype=dtype)
        self.beta = jnp.zeros((dim,), dtype=dtype)
        self.eps = 1e-5
        self.fn = fn

    def __call__(self, x, **kwargs):
        # Fused LN+Linear fast path (normalized activations stay in VMEM).
        if isinstance(self.fn, Linear) and not kwargs:
            return prenorm_linear_pallas(x, self.gamma, self.beta,
                                         self.fn.w, self.fn.b, eps=self.eps)
        # Generic path for arbitrary fn: Pallas LayerNorm, then fn.
        return self.fn(layernorm_pallas(x, self.gamma, self.beta, eps=self.eps),
                       **kwargs)


# ----------------------------------- main ------------------------------------

if __name__ == "__main__":
    key = jax.random.PRNGKey(0)
    kx, kw, kb, kw2, kb2 = jax.random.split(key, 5)

    # 1) Fused LN+Linear, lane-dense shapes, row grid > 1.
    B, S, D, H = 2, 256, 128, 256
    x = jax.random.normal(kx, (B, S, D), dtype=jnp.float32)
    w = jax.random.normal(kw, (D, H), dtype=jnp.float32) * 0.02
    b = jax.random.normal(kb, (H,), dtype=jnp.float32) * 0.02

    prenorm = PreNorm(D, Linear(w, b))
    out = prenorm(x)
    jax.block_until_ready(out)

    mean = jnp.mean(x, axis=-1, keepdims=True)
    var = jnp.mean((x - mean) ** 2, axis=-1, keepdims=True)
    ref_ln = (x - mean) * lax.rsqrt(var + 1e-5) * prenorm.gamma + prenorm.beta
    ref = ref_ln @ w + b
    assert out.shape == (B, S, H)
    assert jnp.max(jnp.abs(out - ref)) < 2e-4

    # 2) Fused path with multiple output-column tiles (exercises the VMEM
    #    LN-cache across j) and a row count that is NOT a multiple of 8.
    H2 = 640
    w2 = jax.random.normal(kw2, (D, H2), dtype=jnp.float32) * 0.02
    b2 = jax.random.normal(kb2, (H2,), dtype=jnp.float32) * 0.02
    x_tail = x[:, : S - 3]
    prenorm2 = PreNorm(D, Linear(w2, b2))
    out2 = prenorm2(x_tail)
    jax.block_until_ready(out2)

    mean2 = jnp.mean(x_tail, axis=-1, keepdims=True)
    var2 = jnp.mean((x_tail - mean2) ** 2, axis=-1, keepdims=True)
    ref2 = ((x_tail - mean2) * lax.rsqrt(var2 + 1e-5)) @ w2 + b2
    assert out2.shape == (B, S - 3, H2)
    assert jnp.max(jnp.abs(out2 - ref2)) < 2e-4

    # 3) Generic (non-fused) path with a non-Linear fn.
    prenorm_gelu = PreNorm(D, lambda y: jax.nn.gelu(y))
    out3 = prenorm_gelu(x_tail)
    jax.block_until_ready(out3)
    ref3 = jax.nn.gelu((x_tail - mean2) * lax.rsqrt(var2 + 1e-5))
    assert jnp.max(jnp.abs(out3 - ref3)) < 2e-4

    print("KERNEL_OK")
</pallas_src>

<mosaic_0001>
module attributes {stable_mosaic.version = 11 : i64} {
  func.func @_prenorm_linear_kernel(%arg0: i32, %arg1: i32, %arg2: memref<256x128xf32, #tpu.memory_space<vmem>>, %arg3: memref<1x128xf32, #tpu.memory_space<vmem>>, %arg4: memref<1x128xf32, #tpu.memory_space<vmem>>, %arg5: memref<128x256xf32, #tpu.memory_space<vmem>>, %arg6: memref<1x256xf32, #tpu.memory_space<vmem>>, %arg7: memref<256x256xf32, #tpu.memory_space<vmem>>, %arg8: memref<256x128xf32, #tpu.memory_space<vmem>>) attributes {dimension_semantics = [#tpu.dimension_semantics<parallel>, #tpu.dimension_semantics<arbitrary>], iteration_bounds = array<i64: 2, 1>, scalar_prefetch = 0 : i64, scratch_operands = 1 : i64, tpu.core_type = #tpu.core_type<tc>, window_params = [{transform_indices = @transform_0, window_bounds = array<i64: 256, 128>}, {pipeline_mode = #tpu.pipeline_mode<synchronous>, transform_indices = @transform_1, window_bounds = array<i64: 1, 128>}, {pipeline_mode = #tpu.pipeline_mode<synchronous>, transform_indices = @transform_2, window_bounds = array<i64: 1, 128>}, {transform_indices = @transform_3, window_bounds = array<i64: 128, 256>}, {transform_indices = @transform_4, window_bounds = array<i64: 1, 256>}, {transform_indices = @transform_5, window_bounds = array<i64: 256, 256>}]} {
    %c0_i32 = arith.constant 0 : i32
    %0 = arith.cmpi eq, %arg1, %c0_i32 : i32
    %1 = arith.extui %0 : i1 to i32
    %c0_i32_0 = arith.constant 0 : i32
    %2 = arith.cmpi ne, %1, %c0_i32_0 : i32
    scf.if %2 {
      %c0_8 = arith.constant 0 : index
      %c0_9 = arith.constant 0 : index
      %10 = vector.load %arg2[%c0_8, %c0_9] : memref<256x128xf32, #tpu.memory_space<vmem>>, vector<256x128xf32>
      %cst_10 = arith.constant dense<0.000000e+00> : vector<256xf32>
      %11 = vector.multi_reduction <add>, %10, %cst_10 [1] : vector<256x128xf32> to vector<256xf32>
      %12 = vector.shape_cast %11 : vector<256xf32> to vector<256x1xf32>
      %cst_11 = arith.constant 1.280000e+02 : f32
      %13 = vector.broadcast %cst_11 : f32 to vector<256x1xf32>
      %14 = arith.divf %12, %13 : vector<256x1xf32>
      %15 = vector.broadcast %14 : vector<256x1xf32> to vector<256x128xf32>
      %16 = arith.subf %10, %15 : vector<256x128xf32>
      %17 = arith.mulf %16, %16 : vector<256x128xf32>
      %cst_12 = arith.constant dense<0.000000e+00> : vector<256xf32>
      %18 = vector.multi_reduction <add>, %17, %cst_12 [1] : vector<256x128xf32> to vector<256xf32>
      %19 = vector.shape_cast %18 : vector<256xf32> to vector<256x1xf32>
      %cst_13 = arith.constant 1.280000e+02 : f32
      %20 = vector.broadcast %cst_13 : f32 to vector<256x1xf32>
      %21 = arith.divf %19, %20 : vector<256x1xf32>
      %cst_14 = arith.constant 9.99999974E-6 : f32
      %22 = vector.broadcast %cst_14 : f32 to vector<256x1xf32>
      %23 = arith.addf %21, %22 : vector<256x1xf32>
      %24 = math.rsqrt %23 : vector<256x1xf32>
      %25 = vector.broadcast %24 : vector<256x1xf32> to vector<256x128xf32>
      %26 = arith.mulf %16, %25 : vector<256x128xf32>
      %c0_15 = arith.constant 0 : index
      %c0_16 = arith.constant 0 : index
      %27 = vector.load %arg3[%c0_15, %c0_16] : memref<1x128xf32, #tpu.memory_space<vmem>>, vector<1x128xf32>
      %28 = vector.broadcast %27 : vector<1x128xf32> to vector<256x128xf32>
      %29 = arith.mulf %26, %28 : vector<256x128xf32>
      %c0_17 = arith.constant 0 : index
      %c0_18 = arith.constant 0 : index
      %30 = vector.load %arg4[%c0_17, %c0_18] : memref<1x128xf32, #tpu.memory_space<vmem>>, vector<1x128xf32>
      %31 = vector.broadcast %30 : vector<1x128xf32> to vector<256x128xf32>
      %32 = arith.addf %29, %31 : vector<256x128xf32>
      %c0_19 = arith.constant 0 : index
      %c0_20 = arith.constant 0 : index
      %33 = vector.load %arg8[%c0_19, %c0_20] : memref<256x128xf32, #tpu.memory_space<vmem>>, vector<256x128xf32>
      tpu.vector_store %arg8[%c0_19, %c0_20], %32 {strides = array<i32>} : memref<256x128xf32, #tpu.memory_space<vmem>>, vector<256x128xf32>,
    } else {
    }
    %c0 = arith.constant 0 : index
    %c0_1 = arith.constant 0 : index
    %3 = vector.load %arg8[%c0, %c0_1] : memref<256x128xf32, #tpu.memory_space<vmem>>, vector<256x128xf32>
    %c0_2 = arith.constant 0 : index
    %c0_3 = arith.constant 0 : index
    %4 = vector.load %arg5[%c0_2, %c0_3] : memref<128x256xf32, #tpu.memory_space<vmem>>, vector<128x256xf32>
    %cst = arith.constant dense<0.000000e+00> : vector<256x256xf32>
    %5 = tpu.matmul %3, %4, %cst {dimension_numbers = #tpu.dot_dimension_numbers<[1], [0], [0], [1], [0, 0, 1, 1], [], []>} : vector<256x128xf32>, vector<128x256xf32>, vector<256x256xf32> -> vector<256x256xf32>
    %c0_4 = arith.constant 0 : index
    %c0_5 = arith.constant 0 : index
    %6 = vector.load %arg6[%c0_4, %c0_5] : memref<1x256xf32, #tpu.memory_space<vmem>>, vector<1x256xf32>
    %7 = vector.broadcast %6 : vector<1x256xf32> to vector<256x256xf32>
    %8 = arith.addf %5, %7 : vector<256x256xf32>
    %c0_6 = arith.constant 0 : index
    %c0_7 = arith.constant 0 : index
    %9 = vector.load %arg7[%c0_6, %c0_7] : memref<256x256xf32, #tpu.memory_space<vmem>>, vector<256x256xf32>
    tpu.vector_store %arg7[%c0_6, %c0_7], %8 {strides = array<i32>} : memref<256x256xf32, #tpu.memory_space<vmem>>, vector<256x256xf32>,
    return
  }
  func.func @transform_0(%arg0: i32, %arg1: i32) -> (i32, i32) {
    %c0_i32 = arith.constant 0 : i32
    %c0_i32_0 = arith.constant 0 : i32
    return %arg0, %c0_i32 : i32, i32
  }
  func.func @transform_1(%arg0: i32, %arg1: i32) -> (i32, i32) {
    %c0_i32 = arith.constant 0 : i32
    %c0_i32_0 = arith.constant 0 : i32
    %c0_i32_1 = arith.constant 0 : i32
    return %c0_i32, %c0_i32_0 : i32, i32
  }
  func.func @transform_2(%arg0: i32, %arg1: i32) -> (i32, i32) {
    %c0_i32 = arith.constant 0 : i32
    %c0_i32_0 = arith.constant 0 : i32
    %c0_i32_1 = arith.constant 0 : i32
    return %c0_i32, %c0_i32_0 : i32, i32
  }
  func.func @transform_3(%arg0: i32, %arg1: i32) -> (i32, i32) {
    %c0_i32 = arith.constant 0 : i32
    %c0_i32_0 = arith.constant 0 : i32
    return %c0_i32, %arg1 : i32, i32
  }
  func.func @transform_4(%arg0: i32, %arg1: i32) -> (i32, i32) {
    %c0_i32 = arith.constant 0 : i32
    %c0_i32_0 = arith.constant 0 : i32
    return %c0_i32, %arg1 : i32, i32
  }
  func.func @transform_5(%arg0: i32, %arg1: i32) -> (i32, i32) {
    %c0_i32 = arith.constant 0 : i32
    return %arg0, %arg1 : i32, i32
  }
}

</mosaic_0001>

<bundles_post_ra>
// kernel: tpu_custom_call.1
= control target key start
LH: loop header
LB: loop body
LE: loop exit
PB: predicated region body
PF: predicated region fallthrough
CT: control target
= control target key end

     0   :  { %s2522_s0 = inlined_call_operand.hbm [shape: f32[512,128], index: 0, kind: input, shape index: {}]   ;;  %s2523_s1 = inlined_call_operand.vmem [shape: f32[1,128], index: 1, kind: input, shape index: {}]   ;;  %s2524_s2 = inlined_call_operand.hbm [shape: f32[1,128], index: 2, kind: input, shape index: {}]   ;;  %s2525_s3 = inlined_call_operand.hbm [shape: f32[128,256], index: 3, kind: input, shape index: {}]   ;;  %s2526_s4 = inlined_call_operand.vmem [shape: f32[1,256], index: 4, kind: input, shape index: {}]   ;;  %s2527_s5 = inlined_call_operand.hbm [shape: f32[512,256], index: 5, kind: output, shape index: {}]  }
   0x1   :  { %2537 = sst [smem:[#allocation15_spill]] %s2524_s2 }
   0x2   :  { %10 = vsyncpa [#allocation4], 0 }
   0x3   :  { %12 = vsyncpa [#allocation4 + $0x1], 0 }
   0x4   :  { %13 = vsyncpa [#allocation7], 0 }
   0x5   :  { %14 = vsyncpa [#allocation5], 0 }
   0x6   :  { %16 = vsyncpa [#allocation5 + $0x1], 0  ;;  %s1764_s18 = smov 0   ;;  %s1766_s19 = smov 0  }
   0x7   :  { %s1768_s20 = smov 0   ;;  %s1770_s21 = smov 0  }
   0x8   :  { %s1772_s22 = smov 0   ;;  %s1774_s23 = smov 0  }
   0x9 LB: > { %2538 = sst [smem:[#allocation13_spill]] %s1721_s23  ;;  %s1345_s24 = sadd.s32 4294967295, %s1721_s23   ;;  %s1721_s23 = sphi %s1774_s23, %s22_s23   ;;  %s1717_s22 = sphi %s1772_s22, %s2564_s22   ;;  %s1713_s21 = sphi %s1770_s21, %s2563_s21   ;;  %s1709_s20 = sphi %s1768_s20, %s2562_s20   ;;  %s1705_s19 = sphi %s1766_s19, %s2561_s19   ;;  %s1701_s18 = sphi %s1764_s18, %s2560_s18  }
   0xa   : > { %s1346_s25 = sadd.s32 4294967294, %s1721_s23   ;;  %p48_p0 = scmp.ne.s32.totalorder %s1709_s20, %s1705_s19 }
   0xb   : > { %p49_p1 = scmp.eq.s32.totalorder %s1721_s23, 0  ;;  %p54_p2 = scmp.ne.s32.totalorder %s1705_s19, %s1701_s18 }
   0xc   : > { %p1802_p3 = scmp.eq.s32.totalorder %s1345_s24, 0  ;;  %p174_p4 = scmp.eq.s32.totalorder %s1345_s24, 1 }
   0xd   : > { %p1806_p5 = por %p49_p1, %p48_p0  ;;  %p180_p6 = scmp.eq.s32.totalorder %s1346_s25, 1 }
   0xe   : > { %s2539_s27 = scalar_select %p1802_p3, 1, 0 }
   0xf   : > { %p1812_p7 = por %p1802_p3, %p54_p2  ;;  %p1816_p8 = por %p174_p4, %p48_p0 }
  0x10   : > { %p1820_p9 = por %p180_p6, %p54_p2  ;;  %p1347_p10 = scmp.ge.s32.totalorder %s1721_s23, 1 }
  0x11   : > { %s2541_s29 = scalar_select %p1812_p7, 1, 0 }
  0x12   : > { %s2542_s30 = scalar_select %p1816_p8, 1, 0 }
  0x13   : > { %s2543_s6 = scalar_select %p1820_p9, 1, 0 }
  0x14   : > { %p187_p11 = scmp.lt.s32.totalorder %s1721_s23, 3  ;;  %s1723_s8 = smov [#allocation6]  }
  0x15   : > { %2544 = sst [smem:[#allocation14_spill]] %s2543_s6  ;;  %s203_s9 = sshll.u32 %s1723_s8, 4  ;;  %s204_s9 = int_to_ptr.vmem [resolvable:$true] %s203_s9 }
  0x16   : > { %p1827_p13 = pnand %p1347_p10, %p187_p11  ;;  %p1432_p1 = scmp.lt.s32.totalorder %s1721_s23, 2 }
  0x17   : > { %s1724_s11 = smov [#allocation8]   ;;  %s1568_s14 = scalar_lea.vmem %s204_s9, 16 }
  0x18   : > { %s2545_s7 = scalar_select %p1827_p13, 1, 0 }
  0x19   : > { %p1415_p0 = pneg %p1827_p13  ;;  %p1836_p4 = pnand %p1432_p1, %p1806_p5 }
  0x1a   : > { %s216_s12 = sshll.u32 %s1724_s11, 4  ;;  %p1569_p10 = scmp.ne.s32.totalorder %s204_s9, %s1568_s14  ;;  %s217_s12 = int_to_ptr.vmem [resolvable:$true] %s216_s12 }
  0x1b   : > { %s2546_s10 = scalar_select %p1836_p4, 1, 0 }
  0x1c   : > { %p1842_p2 = pnand %p1415_p0, %p1802_p3  ;;  %s1575_s15 = scalar_lea.vmem %s204_s9, 32 }
  0x1d   : > { %p1576_p1 = scmp.lt.s32.totalorder %s204_s9, %s204_s9  ;;  %p1577_p12 = scmp.lt.s32.totalorder %s1575_s15, %s1568_s14 }
  0x1e   : > { %p1559_p6 = pneg %p1842_p2 }
  0x1f   : > { %p1578_p9 = por %p1577_p12, %p1576_p1 }
  0x20   : > { %p1571_p5 = pnand %p1569_p10, %p1559_p6 }
  0x22   : > { %p1572_p11 = pneg %p1571_p5 }
  0x24   : > { %p1579_p8 = pnand %p1578_p9, %p1572_p11 }
  0x26   : > { %1582 = shalt.err (!%p1579_p8)
}
  0x27   : > { %s2548_s2 = sld [smem:[#allocation15_spill]]  ;;  %s1594_s24 = scalar_lea.vmem %s217_s12, 4096 }
  0x28   : > { %p1595_p0 = scmp.ne.s32.totalorder %s217_s12, %s1594_s24  ;;  %p1602_p5 = scmp.lt.s32.totalorder %s217_s12, %s217_s12 }
  0x29   : > { %p1603_p7 = scmp.lt.s32.totalorder %s1594_s24, %s1594_s24 }
  0x2a   : > { %p1597_p3 = pnand %p1595_p0, %p1559_p6 }
  0x2b   : > { %p1604_p13 = por %p1603_p7, %p1602_p5 }
  0x2c   : > { %p1598_p10 = pneg %p1597_p3 }
  0x2d   : > { %1418 = dma.hbm_to_vmem [thread:$0]  (!%p1842_p2), %s2548_s2, 16, %s204_s9, [#allocation7]  }
  0x2e   : > { %p1605_p4 = pnand %p1604_p13, %p1598_p10 }
  0x30   : > { %1608 = shalt.err (!%p1605_p4)
}
  0x31   : > { %s1725_s25 = smov 256   ;;  %s1726_s28 = smov 16  }
  0x32   : > { %1421 = dma.hbm_to_vmem [thread:$0]  (!%p1842_p2), %s2525_s3, 4096, %s217_s12, [#allocation7], %s1725_s25, %s1725_s25, %s1726_s28  }
  0x33   : > { %s238_s11 = sand.u32 1, %s1709_s20   ;;  %s34_s14 = sadd.s32 1, %s1717_s22 }
  0x34   : > { %s1352_s15 = sshll.u32 %s238_s11, 8  ;;  %p36_p3 = scmp.ge.s32.totalorder %s34_s14, 2 }
  0x35   : > { %s1368_s16 = sshll.u32 %s1717_s22, 12  ;;  %s242_s17 = scalar_lea.vmem [#allocation3], %s1352_s15 }
  0x36   : > { %s249_s24 = sshll.u32 %s242_s17, 4  ;;  %s2566_s14 = smov (%p36_p3, %s34_s14), 0  ;;  %s250_s24 = int_to_ptr.vmem [resolvable:$true] %s249_s24 }
  0x37   : > { %s248_s23 = scalar_lea.hbm %s2522_s0, %s1368_s16  ;;  %s38_s13 = ssub.s32 %s1717_s22, %s2566_s14 }
  0x38   : > { %p1874_p7 = scmp.eq.s32.totalorder %s38_s13, 0  ;;  %s239_s12 = scalar_lea.sflag [#allocation4], %s238_s11 }
  0x39   : > { %p2550_p8 = scmp.ne.s32.totalorder %s2546_s10, 0  ;;  %s1622_s25 = scalar_lea.vmem %s250_s24, 4096 }
  0x3a   : > { %p1623_p12 = scmp.ne.s32.totalorder %s250_s24, %s1622_s25  ;;  %s1727_s28 = smov [#allocation3]  }
  0x3b   : > { %p1611_p9 = pneg %p2550_p8  ;;  %s1627_s8 = sshll.u32 %s1727_s28, 4  ;;  %s1628_s8 = int_to_ptr.vmem [resolvable:$false] %s1627_s8 }
  0x3c   : > { %s1629_s9 = scalar_lea.vmem %s1628_s8, 8192  ;;  %p1630_p2 = scmp.lt.s32.totalorder %s250_s24, %s1628_s8 }
  0x3d   : > { %p1625_p13 = pnand %p1623_p12, %p1611_p9  ;;  %p1631_p6 = scmp.lt.s32.totalorder %s1629_s9, %s1622_s25 }
  0x3f   : > { %p1626_p4 = pneg %p1625_p13  ;;  %p1632_p11 = por %p1631_p6, %p1630_p2 }
  0x41   : > { %p1633_p1 = pnand %p1632_p11, %p1626_p4 }
  0x43   : > { %1636 = shalt.err (!%p1633_p1)
}
  0x44   : > { %s1728_s2 = smov 128   ;;  %s1729_s26 = smov 8  }
  0x45   : > { %1425 = dma.hbm_to_vmem [thread:$0]  (!%p2550_p8), %s248_s23, 4096, %s250_s24, %s239_s12, %s1728_s2, %s1728_s2, %s1729_s26  }
  0x46   : > { %s2551_s11 = sadd.s32 1, %s1709_s20  ;;  %p2552_p0 = scmp.ne.s32.totalorder %s2545_s7, 0 }
  0x47   : > { %s1887_s15 = scalar_select %p1874_p7, %s1709_s20, %s2551_s11  }
  0x48   : > { %261 = sbr.rel (%p2552_p0) target bundleno = 663 (0x297), region = 40  ;;  %s1892_s16 = sand.u32 (!%p2552_p0), 1, %s1705_s19  }
  0x49   : > { %s1356_s17 = sshll.u32 (!%p2552_p0), %s1892_s16, 8  ;;  %s264_s13 = scalar_lea.sflag (!%p2552_p0), [#allocation4], %s1892_s16 }
  0x4a   : > { %s1896_s25 = scalar_lea.vmem (!%p2552_p0), [#allocation3], %s1356_s17  ;;  %p2553_p10 = scmp.ne.s32.totalorder (!%p2552_p0), %s2541_s29, 0 }
  0x4d   : > { %1688 = dma.done.wait (%p2553_p10), %s264_s13, 4096  }
  0x4e   : > { %1690 = vsyncadd (%p2553_p10), %s264_s13, 4294963200  ;;  %p2554_p5 = scmp.ne.s32.totalorder %s2539_s27, 0 }
  0x50   : > { %1692 = dma.done.wait (%p2554_p5), [#allocation7], 4112  }
  0x51   : > { %1694 = vsyncadd (%p2554_p5), [#allocation7], 4294963184  ;;  %v1907_v0 = vld [vmem:[%s1896_s25] sm:$0xff]  ;;  %v1910_v1 = vld [vmem:[%s1896_s25 + $0x8] sm:$0xff]  ;;  %s1359_s7 = sshll.u32 %s1892_s16, 9  ;;  %s1370_s24 = sshll.u32 %s1713_s21, 13 }
  0x52   : > { %351 = vadd.xlane.f32.xlu0 %v1907_v0  ;;  %353 = vadd.xlane.f32.xlu1 %v1910_v1  ;;  %v1915_v2 = vld [vmem:[%s1896_s25 + $0x80] sm:$0xff]  ;;  %v1918_v3 = vld [vmem:[%s1896_s25 + $0x88] sm:$0xff]  ;;  %v1923_v4 = vld [vmem:[%s1896_s25 + $0x10] sm:$0xff]  ;;  %s2338_s10 = scalar_lea.vmem [#allocation9], %s1359_s7  ;;  %s2469_s9 = scalar_lea.hbm %s2527_s5, %s1370_s24 }
  0x53   : > { %v1926_v5 = vld [vmem:[%s1896_s25 + $0x90] sm:$0xff]  ;;  %v1931_v6 = vld [vmem:[%s1896_s25 + $0x18] sm:$0xff]  ;;  %v1939_v8 = vld [vmem:[%s1896_s25 + $0x20] sm:$0xff]  ;;  %s1228_s12 = sshll.u32 %s2338_s10, 4  ;;  %s1212_s21 = scalar_lea.sflag [#allocation5], %s1892_s16  ;;  %s2471_s12 = int_to_ptr.vmem [resolvable:$true] %s1228_s12 }
  0x54   : > { %v1934_v7 = vld [vmem:[%s1896_s25 + $0x98] sm:$0xff]  ;;  %v1942_v9 = vld [vmem:[%s1896_s25 + $0xa0] sm:$0xff]  ;;  %v1947_v10 = vld [vmem:[%s1896_s25 + $0x28] sm:$0xff]  ;;  %s1637_s2 = scalar_lea.vmem %s2471_s12, 8192  ;;  %p2555_p7 = scmp.ne.s32.totalorder %s2542_s30, 0 }
  0x55   : > { %v1950_v11 = vld [vmem:[%s1896_s25 + $0xa8] sm:$0xff]  ;;  %v1955_v12 = vld [vmem:[%s1896_s25 + $0x30] sm:$0xff]  ;;  %v1963_v14 = vld [vmem:[%s1896_s25 + $0x38] sm:$0xff]  ;;  %p1638_p3 = scmp.ne.s32.totalorder %s2471_s12, %s1637_s2  ;;  %s1731_s26 = smov [#allocation9]  }
  0x56   : > { %383 = vadd.xlane.f32.xlu0 %v1915_v2  ;;  %385 = vadd.xlane.f32.xlu1 %v1918_v3  ;;  %v1958_v13 = vld [vmem:[%s1896_s25 + $0xb0] sm:$0xff]  ;;  %v1966_v15 = vld [vmem:[%s1896_s25 + $0xb8] sm:$0xff]  ;;  %v1971_v16 = vld [vmem:[%s1896_s25 + $0x40] sm:$0xff]  ;;  %s1641_s11 = sshll.u32 %s1731_s26, 4  ;;  %s1642_s11 = int_to_ptr.vmem [resolvable:$false] %s1641_s11 }
  0x57   : > { %v1974_v17 = vld [vmem:[%s1896_s25 + $0xc0] sm:$0xff]  ;;  %v1979_v18 = vld [vmem:[%s1896_s25 + $0x48] sm:$0xff]  ;;  %v1987_v20 = vld [vmem:[%s1896_s25 + $0x50] sm:$0xff]  ;;  %p1639_p8 = pnand %p1638_p3, %p2555_p7  ;;  %s1643_s17 = scalar_lea.vmem %s1642_s11, 16384 }
  0x58   : > { %v1982_v19 = vld [vmem:[%s1896_s25 + $0xc8] sm:$0xff]  ;;  %v1990_v21 = vld [vmem:[%s1896_s25 + $0xd0] sm:$0xff]  ;;  %v1995_v22 = vld [vmem:[%s1896_s25 + $0x58] sm:$0xff]  ;;  %p1644_p12 = scmp.lt.s32.totalorder %s2471_s12, %s1642_s11  ;;  %p1645_p13 = scmp.lt.s32.totalorder %s1643_s17, %s1637_s2 }
  0x59   : > { %v1998_v23 = vld [vmem:[%s1896_s25 + $0xd8] sm:$0xff]  ;;  %v2003_v24 = vld [vmem:[%s1896_s25 + $0x60] sm:$0xff]  ;;  %v2011_v26 = vld [vmem:[%s1896_s25 + $0x68] sm:$0xff]  ;;  %p1640_p9 = pneg %p1639_p8 }
  0x5a   : > { %355 = vadd.xlane.f32.xlu0 %v1923_v4  ;;  %387 = vadd.xlane.f32.xlu1 %v1926_v5  ;;  %v2006_v25 = vld [vmem:[%s1896_s25 + $0xe0] sm:$0xff]  ;;  %v2014_v27 = vld [vmem:[%s1896_s25 + $0xe8] sm:$0xff]  ;;  %v2019_v28 = vld [vmem:[%s1896_s25 + $0x70] sm:$0xff]  ;;  %p1646_p4 = por %p1645_p13, %p1644_p12 }
  0x5b   : > { %v2022_v29 = vld [vmem:[%s1896_s25 + $0xf0] sm:$0xff]  ;;  %v2027_v30 = vld [vmem:[%s1896_s25 + $0x78] sm:$0xff]  ;;  %v874_v35 = vld [vmem:[#allocation8 + $0xe0] sm:$0xff] }
  0x5c   : > { %v2030_v31 = vld [vmem:[%s1896_s25 + $0xf8] sm:$0xff]  ;;  %v875_v34 = vld [vmem:[#allocation8 + $0xe8] sm:$0xff]  ;;  %v870_v39 = vld [vmem:[#allocation8 + $0xc0] sm:$0xff]  ;;  %p1647_p2 = pnand %p1646_p4, %p1640_p9 }
  0x5d   : > { %v877_v32 = vld [vmem:[#allocation8 + $0xf8] sm:$0xff]  ;;  %v876_v33 = vld [vmem:[#allocation8 + $0xf0] sm:$0xff]  ;;  %v871_v38 = vld [vmem:[#allocation8 + $0xc8] sm:$0xff] }
  0x5e   : > { %357 = vadd.xlane.f32.xlu0 %v1931_v6  ;;  %389 = vadd.xlane.f32.xlu1 %v1934_v7  ;;  %v873_v36 = vld [vmem:[#allocation8 + $0xd8] sm:$0xff]  ;;  %v872_v37 = vld [vmem:[#allocation8 + $0xd0] sm:$0xff] }
  0x5f   : > { %890 = vmatprep.subr.mxu0 %v877_v32  ;;  %1371 = vmatprep.subr.mxu1 %v877_v32 }
  0x60   : > { %891 = vmatpush1.msra.mxu0 %v876_v33  ;;  %1387 = vmatpush1.msra.mxu1 %v876_v33 }
  0x61   : > { %892 = vmatprep.subr.mxu0 %v875_v34  ;;  %1372 = vmatprep.subr.mxu1 %v875_v34  ;;  %v869_v34 = vld [vmem:[#allocation8 + $0xb8] sm:$0xff] }
  0x62   : > { %359 = vadd.xlane.f32.xlu0 %v1939_v8  ;;  %391 = vadd.xlane.f32.xlu1 %v1942_v9 }
  0x63   : > { %893 = vmatpush1.msra.mxu0 %v874_v35  ;;  %1388 = vmatpush1.msra.mxu1 %v874_v35 }
  0x64   : > { %894 = vmatprep.subr.mxu0 %v873_v36  ;;  %1373 = vmatprep.subr.mxu1 %v873_v36 }
  0x65   : > { %895 = vmatpush1.msra.mxu0 %v872_v37  ;;  %1389 = vmatpush1.msra.mxu1 %v872_v37 }
  0x66   : > { %361 = vadd.xlane.f32.xlu0 %v1947_v10  ;;  %393 = vadd.xlane.f32.xlu1 %v1950_v11 }
  0x67   : > { %896 = vmatprep.subr.mxu0 %v871_v38  ;;  %1374 = vmatprep.subr.mxu1 %v871_v38  ;;  %v868_v38 = vld [vmem:[#allocation8 + $0xb0] sm:$0xff] }
  0x68   : > { %897 = vmatpush1.msra.mxu0 %v870_v39  ;;  %1390 = vmatpush1.msra.mxu1 %v870_v39 }
  0x69   : > { %898 = vmatprep.subr.mxu0 %v869_v34  ;;  %1375 = vmatprep.subr.mxu1 %v869_v34 }
  0x6a   : > { %363 = vadd.xlane.f32.xlu0 %v1955_v12  ;;  %395 = vadd.xlane.f32.xlu1 %v1958_v13 }
  0x6b   : > { %899 = vmatpush1.msra.mxu0 %v868_v38  ;;  %1391 = vmatpush1.msra.mxu1 %v868_v38 }
  0x6e   : > { %365 = vadd.xlane.f32.xlu0 %v1963_v14  ;;  %397 = vadd.xlane.f32.xlu1 %v1966_v15 }
  0x72   : > { %367 = vadd.xlane.f32.xlu0 %v1971_v16  ;;  %399 = vadd.xlane.f32.xlu1 %v1974_v17 }
  0x76   : > { %369 = vadd.xlane.f32.xlu0 %v1979_v18  ;;  %401 = vadd.xlane.f32.xlu1 %v1982_v19 }
  0x7a   : > { %371 = vadd.xlane.f32.xlu0 %v1987_v20  ;;  %403 = vadd.xlane.f32.xlu1 %v1990_v21 }
  0x7e   : > { %373 = vadd.xlane.f32.xlu0 %v1995_v22  ;;  %405 = vadd.xlane.f32.xlu1 %v1998_v23 }
  0x82   : > { %375 = vadd.xlane.f32.xlu0 %v2003_v24  ;;  %407 = vadd.xlane.f32.xlu1 %v2006_v25 }
  0x86   : > { %377 = vadd.xlane.f32.xlu0 %v2011_v26  ;;  %409 = vadd.xlane.f32.xlu1 %v2014_v27 }
  0x8a   : > { %379 = vadd.xlane.f32.xlu0 %v2019_v28  ;;  %411 = vadd.xlane.f32.xlu1 %v2022_v29 }
  0x8e   : > { %381 = vadd.xlane.f32.xlu0 %v2027_v30  ;;  %413 = vadd.xlane.f32.xlu1 %v2030_v31 }
  0xdb   : > { %v352_v40 = vpop.xlane.xlu0 %351  ;;  %v354_v41 = vpop.xlane.xlu1 %353 }
  0xdc   : > { %v416_v42 = vmul.f32 0.0078125, %v352_v40  ;;  %v417_v43 = vmul.f32 0.0078125, %v354_v41  ;;  %v866_v41 = vld [vmem:[#allocation8 + $0xa0] sm:$0xff] }
  0xde   : > { %v2035_v44 = vsub.f32 %v1907_v0, %v416_v42  ;;  %v2038_v45 = vsub.f32 %v1910_v1, %v417_v43 }
  0xdf   : > { %v384_v46 = vpop.xlane.xlu0 %383  ;;  %v386_v47 = vpop.xlane.xlu1 %385 }
  0xe0   : > { %v432_v48 = vmul.f32 0.0078125, %v384_v46  ;;  %v480_v49 = vmul.f32 %v2035_v44, %v2035_v44  ;;  %v433_v50 = vmul.f32 0.0078125, %v386_v47  ;;  %v481_v53 = vmul.f32 %v2038_v45, %v2038_v45 }
  0xe2   : > { %v2043_v51 = vsub.f32 %v1915_v2, %v432_v48  ;;  %512 = vadd.xlane.f32.xlu0 %v480_v49  ;;  %v2046_v52 = vsub.f32 %v1918_v3, %v433_v50  ;;  %v864_v49 = vld [vmem:[#allocation8 + $0x90] sm:$0xff] }
  0xe3   : > { %v356_v54 = vpop.xlane.xlu0 %355  ;;  %v388_v55 = vpop.xlane.xlu1 %387 }
  0xe4   : > { %v418_v56 = vmul.f32 0.0078125, %v356_v54  ;;  %v496_v57 = vmul.f32 %v2043_v51, %v2043_v51  ;;  %v434_v58 = vmul.f32 0.0078125, %v388_v55  ;;  %v497_v61 = vmul.f32 %v2046_v52, %v2046_v52  ;;  %v863_v54 = vld [vmem:[#allocation8 + $0x88] sm:$0xff] }
  0xe6   : > { %v2053_v59 = vsub.f32 %v1923_v4, %v418_v56  ;;  %514 = vadd.xlane.f32.xlu0 %v481_v53  ;;  %544 = vadd.xlane.f32.xlu1 %v496_v57  ;;  %v2056_v60 = vsub.f32 %v1926_v5, %v434_v58  ;;  %v862_v57 = vld [vmem:[#allocation8 + $0x80] sm:$0xff] }
  0xe7   : > { %v358_v62 = vpop.xlane.xlu0 %357  ;;  %v390_v63 = vpop.xlane.xlu1 %389 }
  0xe8   : > { %v419_v0 = vmul.f32 0.0078125, %v358_v62  ;;  %v482_v1 = vmul.f32 %v2053_v59, %v2053_v59  ;;  %v435_v2 = vmul.f32 0.0078125, %v390_v63  ;;  %v498_v5 = vmul.f32 %v2056_v60, %v2056_v60  ;;  %v861_v62 = vld [vmem:[#allocation8 + $0x78] sm:$0xff] }
  0xea   : > { %v2063_v3 = vsub.f32 %v1931_v6, %v419_v0  ;;  %546 = vadd.xlane.f32.xlu1 %v497_v61  ;;  %516 = vadd.xlane.f32.xlu0 %v482_v1  ;;  %v2066_v4 = vsub.f32 %v1934_v7, %v435_v2  ;;  %v867_v6 = vld [vmem:[#allocation8 + $0xa8] sm:$0xff] }
  0xeb   : > { %v360_v32 = vpop.xlane.xlu0 %359  ;;  %v392_v33 = vpop.xlane.xlu1 %391  ;;  %900 = vmatprep.subr.mxu0 %v867_v6  ;;  %1376 = vmatprep.subr.mxu1 %v867_v6  ;;  %v859_v2 = vld [vmem:[#allocation8 + $0x68] sm:$0xff]  ;;  %v856_v6 = vld [vmem:[#allocation8 + $0x50] sm:$0xff] }
  0xec   : > { %v420_v35 = vmul.f32 0.0078125, %v360_v32  ;;  %v483_v36 = vmul.f32 %v2063_v3, %v2063_v3  ;;  %v436_v37 = vmul.f32 0.0078125, %v392_v33  ;;  %v499_v40 = vmul.f32 %v2066_v4, %v2066_v4  ;;  %901 = vmatpush1.msra.mxu0 %v866_v41  ;;  %1392 = vmatpush1.msra.mxu1 %v866_v41 }
  0xee   : > { %v2073_v7 = vsub.f32 %v1939_v8, %v420_v35  ;;  %548 = vadd.xlane.f32.xlu1 %v498_v5  ;;  %518 = vadd.xlane.f32.xlu0 %v483_v36  ;;  %v2076_v39 = vsub.f32 %v1942_v9, %v436_v37  ;;  %v865_v8 = vld [vmem:[#allocation8 + $0x98] sm:$0xff] }
  0xef   : > { %v362_v42 = vpop.xlane.xlu0 %361  ;;  %v394_v43 = vpop.xlane.xlu1 %393  ;;  %902 = vmatprep.subr.mxu0 %v865_v8  ;;  %1377 = vmatprep.subr.mxu1 %v865_v8  ;;  %v857_v36 = vld [vmem:[#allocation8 + $0x58] sm:$0xff] }
  0xf0   : > { %v421_v46 = vmul.f32 0.0078125, %v362_v42  ;;  %v484_v47 = vmul.f32 %v2073_v7, %v2073_v7  ;;  %v437_v48 = vmul.f32 0.0078125, %v394_v43  ;;  %v500_v53 = vmul.f32 %v2076_v39, %v2076_v39  ;;  %903 = vmatpush1.msra.mxu0 %v864_v49  ;;  %1393 = vmatpush1.msra.mxu1 %v864_v49  ;;  %v853_v49 = vld [vmem:[#allocation8 + $0x38] sm:$0xff] }
  0xf1   : > { %904 = vmatprep.subr.mxu0 %v863_v54  ;;  %1378 = vmatprep.subr.mxu1 %v863_v54 }
  0xf2   : > { %v2083_v9 = vsub.f32 %v1947_v10, %v421_v46  ;;  %550 = vadd.xlane.f32.xlu1 %v499_v40  ;;  %520 = vadd.xlane.f32.xlu0 %v484_v47  ;;  %v2086_v50 = vsub.f32 %v1950_v11, %v437_v48  ;;  %v860_v11 = vld [vmem:[#allocation8 + $0x70] sm:$0xff]  ;;  %v854_v47 = vld [vmem:[#allocation8 + $0x40] sm:$0xff] }
  0xf3   : > { %v364_v55 = vpop.xlane.xlu0 %363  ;;  %v396_v56 = vpop.xlane.xlu1 %395  ;;  %905 = vmatpush1.msra.mxu0 %v862_v57  ;;  %1394 = vmatpush1.msra.mxu1 %v862_v57 }
  0xf4   : > { %v422_v58 = vmul.f32 0.0078125, %v364_v55  ;;  %v485_v61 = vmul.f32 %v2083_v9, %v2083_v9  ;;  %v438_v10 = vmul.f32 0.0078125, %v396_v56  ;;  %v501_v1 = vmul.f32 %v2086_v50, %v2086_v50  ;;  %906 = vmatprep.subr.mxu0 %v861_v62  ;;  %1379 = vmatprep.subr.mxu1 %v861_v62  ;;  %v850_v62 = vld [vmem:[#allocation8 + $0x20] sm:$0xff] }
  0xf5   : > { %907 = vmatpush1.msra.mxu0 %v860_v11  ;;  %1395 = vmatpush1.msra.mxu1 %v860_v11 }
  0xf6   : > { %v2093_v63 = vsub.f32 %v1955_v12, %v422_v58  ;;  %552 = vadd.xlane.f32.xlu1 %v500_v53  ;;  %522 = vadd.xlane.f32.xlu0 %v485_v61  ;;  %v2096_v0 = vsub.f32 %v1958_v13, %v438_v10  ;;  %v858_v12 = vld [vmem:[#allocation8 + $0x60] sm:$0xff]  ;;  %v851_v58 = vld [vmem:[#allocation8 + $0x28] sm:$0xff] }
  0xf7   : > { %v366_v5 = vpop.xlane.xlu0 %365  ;;  %v398_v32 = vpop.xlane.xlu1 %397  ;;  %908 = vmatprep.subr.mxu0 %v859_v2  ;;  %1380 = vmatprep.subr.mxu1 %v859_v2 }
  0xf8   : > { %v423_v33 = vmul.f32 0.0078125, %v366_v5  ;;  %v486_v34 = vmul.f32 %v2093_v63, %v2093_v63  ;;  %v439_v35 = vmul.f32 0.0078125, %v398_v32  ;;  %v502_v38 = vmul.f32 %v2096_v0, %v2096_v0  ;;  %909 = vmatpush1.msra.mxu0 %v858_v12  ;;  %1396 = vmatpush1.msra.mxu1 %v858_v12  ;;  %v847_v12 = vld [vmem:[#allocation8 + $0x8] sm:$0xff] }
  0xf9   : > { %910 = vmatprep.subr.mxu0 %v857_v36  ;;  %1381 = vmatprep.subr.mxu1 %v857_v36 }
  0xfa   : > { %v2103_v13 = vsub.f32 %v1963_v14, %v423_v33  ;;  %554 = vadd.xlane.f32.xlu1 %v501_v1  ;;  %524 = vadd.xlane.f32.xlu0 %v486_v34  ;;  %v2106_v37 = vsub.f32 %v1966_v15, %v439_v35  ;;  %v855_v14 = vld [vmem:[#allocation8 + $0x48] sm:$0xff]  ;;  %v848_v33 = vld [vmem:[#allocation8 + $0x10] sm:$0xff] }
  0xfb   : > { %v368_v40 = vpop.xlane.xlu0 %367  ;;  %v400_v41 = vpop.xlane.xlu1 %399  ;;  %911 = vmatpush1.msra.mxu0 %v856_v6  ;;  %1397 = vmatpush1.msra.mxu1 %v856_v6  ;;  %v1730_v6 = vmov 0.0  }
  0xfc   : > { %v424_v42 = vmul.f32 0.0078125, %v368_v40  ;;  %v487_v43 = vmul.f32 %v2103_v13, %v2103_v13  ;;  %v440_v46 = vmul.f32 0.0078125, %v400_v41  ;;  %v503_v8 = vmul.f32 %v2106_v37, %v2106_v37  ;;  %912 = vmatprep.subr.mxu0 %v855_v14  ;;  %1382 = vmatprep.subr.mxu1 %v855_v14 }
  0xfd   : > { %913 = vmatpush1.msra.mxu0 %v854_v47  ;;  %1398 = vmatpush1.msra.mxu1 %v854_v47 }
  0xfe   : > { %v2113_v15 = vsub.f32 %v1971_v16, %v424_v42  ;;  %556 = vadd.xlane.f32.xlu1 %v502_v38  ;;  %526 = vadd.xlane.f32.xlu0 %v487_v43  ;;  %v2116_v48 = vsub.f32 %v1974_v17, %v440_v46  ;;  %v852_v16 = vld [vmem:[#allocation8 + $0x30] sm:$0xff]  ;;  %v846_v42 = vld [vmem:[#allocation8] sm:$0xff] }
  0xff   : > { %v370_v53 = vpop.xlane.xlu0 %369  ;;  %v402_v54 = vpop.xlane.xlu1 %401  ;;  %914 = vmatprep.subr.mxu0 %v853_v49  ;;  %1383 = vmatprep.subr.mxu1 %v853_v49 }
 0x100   : > { %v425_v55 = vmul.f32 0.0078125, %v370_v53  ;;  %v488_v56 = vmul.f32 %v2113_v15, %v2113_v15  ;;  %v441_v57 = vmul.f32 0.0078125, %v402_v54  ;;  %v504_v10 = vmul.f32 %v2116_v48, %v2116_v48  ;;  %915 = vmatpush1.msra.mxu0 %v852_v16  ;;  %1399 = vmatpush1.msra.mxu1 %v852_v16 }
 0x101   : > { %916 = vmatprep.subr.mxu0 %v851_v58  ;;  %1384 = vmatprep.subr.mxu1 %v851_v58 }
 0x102   : > { %v2123_v17 = vsub.f32 %v1979_v18, %v425_v55  ;;  %558 = vadd.xlane.f32.xlu1 %v503_v8  ;;  %528 = vadd.xlane.f32.xlu0 %v488_v56  ;;  %v2126_v61 = vsub.f32 %v1982_v19, %v441_v57  ;;  %v849_v18 = vld [vmem:[#allocation8 + $0x18] sm:$0xff] }
 0x103   : > { %v372_v11 = vpop.xlane.xlu0 %371  ;;  %v404_v1 = vpop.xlane.xlu1 %403  ;;  %917 = vmatpush1.msra.mxu0 %v850_v62  ;;  %1400 = vmatpush1.msra.mxu1 %v850_v62 }
 0x104   : > { %v426_v2 = vmul.f32 0.0078125, %v372_v11  ;;  %v489_v5 = vmul.f32 %v2123_v17, %v2123_v17  ;;  %v442_v32 = vmul.f32 0.0078125, %v404_v1  ;;  %v505_v35 = vmul.f32 %v2126_v61, %v2126_v61  ;;  %918 = vmatprep.subr.mxu0 %v849_v18  ;;  %954 = vmatprep.mubr.f32.mxu0 %v1730_v6 }
 0x105   : > { %919 = vmatpush1.msra.mxu0 %v848_v33  ;;  %1385 = vmatprep.subr.mxu1 %v849_v18 }
 0x106   : > { %v2133_v19 = vsub.f32 %v1987_v20, %v426_v2  ;;  %560 = vadd.xlane.f32.xlu1 %v504_v10  ;;  %530 = vadd.xlane.f32.xlu0 %v489_v5  ;;  %v2136_v34 = vsub.f32 %v1990_v21, %v442_v32 }
 0x107   : > { %v374_v36 = vpop.xlane.xlu0 %373  ;;  %v406_v38 = vpop.xlane.xlu1 %405  ;;  %920 = vmatprep.subr.mxu0 %v847_v12  ;;  %1401 = vmatpush1.msra.mxu1 %v848_v33 }
 0x108   : > { %v427_v40 = vmul.f32 0.0078125, %v374_v36  ;;  %v490_v20 = vmul.f32 %v2133_v19, %v2133_v19  ;;  %v443_v41 = vmul.f32 0.0078125, %v406_v38  ;;  %v506_v46 = vmul.f32 %v2136_v34, %v2136_v34  ;;  %921 = vmatpush1.msra.mxu0 %v846_v42  ;;  %1386 = vmatprep.subr.mxu1 %v847_v12 }
 0x109   : > { %1402 = vmatpush1.msra.mxu1 %v846_v42  ;;  %1050 = vmatprep.mubr.f32.mxu1 %v1730_v6 }
 0x10a   : > { %v2144_v21 = vsub.f32 %v1995_v22, %v427_v40  ;;  %562 = vadd.xlane.f32.xlu1 %v505_v35  ;;  %532 = vadd.xlane.f32.xlu0 %v490_v20  ;;  %v2147_v43 = vsub.f32 %v1998_v23, %v443_v41 }
 0x10b   : > { %v376_v14 = vpop.xlane.xlu0 %375  ;;  %v408_v47 = vpop.xlane.xlu1 %407 }
 0x10c   : > { %v428_v8 = vmul.f32 0.0078125, %v376_v14  ;;  %v491_v49 = vmul.f32 %v2144_v21, %v2144_v21  ;;  %v444_v53 = vmul.f32 0.0078125, %v408_v47  ;;  %v507_v54 = vmul.f32 %v2147_v43, %v2147_v43 }
 0x10e   : > { %v2155_v22 = vsub.f32 %v2003_v24, %v428_v8  ;;  %564 = vadd.xlane.f32.xlu1 %v506_v46  ;;  %534 = vadd.xlane.f32.xlu0 %v491_v49  ;;  %v2158_v23 = vsub.f32 %v2006_v25, %v444_v53 }
 0x10f   : > { %v378_v55 = vpop.xlane.xlu0 %377  ;;  %v410_v56 = vpop.xlane.xlu1 %409 }
 0x110   : > { %v429_v57 = vmul.f32 0.0078125, %v378_v55  ;;  %v492_v16 = vmul.f32 %v2155_v22, %v2155_v22  ;;  %v445_v58 = vmul.f32 0.0078125, %v410_v56  ;;  %v508_v25 = vmul.f32 %v2158_v23, %v2158_v23 }
 0x112   : > { %v2165_v10 = vsub.f32 %v2011_v26, %v429_v57  ;;  %566 = vadd.xlane.f32.xlu1 %v507_v54  ;;  %536 = vadd.xlane.f32.xlu0 %v492_v16  ;;  %v2168_v24 = vsub.f32 %v2014_v27, %v445_v58 }
 0x113   : > { %v380_v62 = vpop.xlane.xlu0 %379  ;;  %v412_v11 = vpop.xlane.xlu1 %411 }
 0x114   : > { %v430_v1 = vmul.f32 0.0078125, %v380_v62  ;;  %v493_v2 = vmul.f32 %v2165_v10, %v2165_v10  ;;  %v446_v5 = vmul.f32 0.0078125, %v412_v11  ;;  %v509_v27 = vmul.f32 %v2168_v24, %v2168_v24 }
 0x116   : > { %v2175_v32 = vsub.f32 %v2019_v28, %v430_v1  ;;  %568 = vadd.xlane.f32.xlu1 %v508_v25  ;;  %538 = vadd.xlane.f32.xlu0 %v493_v2  ;;  %v2178_v26 = vsub.f32 %v2022_v29, %v446_v5 }
 0x117   : > { %v382_v18 = vpop.xlane.xlu0 %381  ;;  %v414_v33 = vpop.xlane.xlu1 %413 }
 0x118   : > { %v431_v35 = vmul.f32 0.0078125, %v382_v18  ;;  %v494_v12 = vmul.f32 %v2175_v32, %v2175_v32  ;;  %v447_v36 = vmul.f32 0.0078125, %v414_v33  ;;  %v510_v29 = vmul.f32 %v2178_v26, %v2178_v26 }
 0x11a   : > { %v2185_v38 = vsub.f32 %v2027_v30, %v431_v35  ;;  %570 = vadd.xlane.f32.xlu1 %v509_v27  ;;  %540 = vadd.xlane.f32.xlu0 %v494_v12  ;;  %v2188_v28 = vsub.f32 %v2030_v31, %v447_v36  ;;  %v2199_v12 = vld [vmem:[%s2523_s1] ss:$0 sm:$0xff] }
 0x11c   : > { %v495_v40 = vmul.f32 %v2185_v38, %v2185_v38  ;;  %v511_v20 = vmul.f32 %v2188_v28, %v2188_v28 }
 0x11e   : > { %572 = vadd.xlane.f32.xlu1 %v510_v29  ;;  %542 = vadd.xlane.f32.xlu0 %v495_v40 }
 0x122   : > { %574 = vadd.xlane.f32.xlu1 %v511_v20 }
 0x16b   : > { %v513_v41 = vpop.xlane.xlu0 %512 }
 0x16c   : > { %v576_v30 = vmul.f32 0.0078125, %v513_v41 }
 0x16e   : > { %v608_v42 = vadd.f32 1e-05, %v576_v30  ;;  %v2202_v30 = vld [vmem:[#allocation6] ss:$0 sm:$0xff] }
 0x16f   : > { %v545_v46 = vpop.xlane.xlu1 %544  ;;  %v515_v14 = vpop.xlane.xlu0 %514 }
 0x170   : > { %1493 = vrsqrt.f32 %v608_v42  ;;  %v592_v31 = vmul.f32 0.0078125, %v545_v46  ;;  %v577_v47 = vmul.f32 0.0078125, %v515_v14 }
 0x172   : > { %v624_v8 = vadd.f32 1e-05, %v592_v31  ;;  %v609_v49 = vadd.f32 1e-05, %v577_v47 }
 0x173   : > { %v547_v53 = vpop.xlane.xlu1 %546  ;;  %v517_v54 = vpop.xlane.xlu0 %516 }
 0x174   : > { %1495 = vrsqrt.f32 %v624_v8  ;;  %v593_v55 = vmul.f32 0.0078125, %v547_v53  ;;  %v578_v56 = vmul.f32 0.0078125, %v517_v54 }
 0x175   : > { %1497 = vrsqrt.f32 %v609_v49 }
 0x176   : > { %v625_v57 = vadd.f32 1e-05, %v593_v55  ;;  %v610_v16 = vadd.f32 1e-05, %v578_v56 }
 0x177   : > { %v549_v58 = vpop.xlane.xlu1 %548  ;;  %v519_v25 = vpop.xlane.xlu0 %518 }
 0x178   : > { %1499 = vrsqrt.f32 %v625_v57  ;;  %v594_v62 = vmul.f32 0.0078125, %v549_v58  ;;  %v579_v11 = vmul.f32 0.0078125, %v519_v25 }
 0x179   : > { %1501 = vrsqrt.f32 %v610_v16 }
 0x17a   : > { %v626_v1 = vadd.f32 1e-05, %v594_v62  ;;  %v611_v2 = vadd.f32 1e-05, %v579_v11 }
 0x17b   : > { %v551_v5 = vpop.xlane.xlu1 %550  ;;  %v521_v27 = vpop.xlane.xlu0 %520 }
 0x17c   : > { %1503 = vrsqrt.f32 %v626_v1  ;;  %v595_v18 = vmul.f32 0.0078125, %v551_v5  ;;  %v580_v33 = vmul.f32 0.0078125, %v521_v27 }
 0x17d   : > { %v1494_v35 = vpop.eup %1493  ;;  %1505 = vrsqrt.f32 %v611_v2 }
 0x17e   : > { %v627_v36 = vadd.f32 1e-05, %v595_v18  ;;  %v612_v29 = vadd.f32 1e-05, %v580_v33  ;;  %v672_v40 = vmul.f32 %v1494_v35, %v2035_v44 }
 0x17f   : > { %v553_v20 = vpop.xlane.xlu1 %552  ;;  %v523_v41 = vpop.xlane.xlu0 %522 }
 0x180   : > { %1507 = vrsqrt.f32 %v627_v36  ;;  %v596_v42 = vmul.f32 0.0078125, %v553_v20  ;;  %v581_v46 = vmul.f32 0.0078125, %v523_v41  ;;  %v711_v14 = vmul.f32 %v2199_v12, %v672_v40 }
 0x181   : > { %v1496_v31 = vpop.eup %1495  ;;  %1509 = vrsqrt.f32 %v612_v29 }
 0x182   : > { %v1498_v47 = vpop.eup %1497  ;;  %v628_v8 = vadd.f32 1e-05, %v596_v42  ;;  %v613_v49 = vadd.f32 1e-05, %v581_v46  ;;  %v750_v53 = vadd.f32 %v2202_v30, %v711_v14  ;;  %v688_v54 = vmul.f32 %v1496_v31, %v2043_v51 }
 0x183   : > { %v555_v55 = vpop.xlane.xlu1 %554  ;;  %v525_v44 = vpop.xlane.xlu0 %524  ;;  %v673_v56 = vmul.f32 %v1498_v47, %v2038_v45 }
 0x184   : > { %1511 = vrsqrt.f32 %v628_v8  ;;  %v597_v57 = vmul.f32 0.0078125, %v555_v55  ;;  %v582_v16 = vmul.f32 0.0078125, %v525_v44  ;;  %955 = vmatmul.mubr.f32.vlgmr.msra.gmra.mxu0 %v750_v53  ;;  %v727_v58 = vmul.f32 %v2199_v12, %v688_v54 }
 0x185   : > { %v1500_v25 = vpop.eup %1499  ;;  %1513 = vrsqrt.f32 %v613_v49  ;;  %960 = vmatprep.mubr.f32.mxu0 %v1730_v6  ;;  %v712_v62 = vmul.f32 %v2199_v12, %v673_v56 }
 0x186   : > { %v1502_v11 = vpop.eup %1501  ;;  %v629_v1 = vadd.f32 1e-05, %v597_v57  ;;  %v614_v2 = vadd.f32 1e-05, %v582_v16  ;;  %v766_v51 = vadd.f32 %v2202_v30, %v727_v58  ;;  %v689_v5 = vmul.f32 %v1500_v25, %v2046_v52 }
 0x187   : > { %v557_v45 = vpop.xlane.xlu1 %556  ;;  %v527_v27 = vpop.xlane.xlu0 %526  ;;  %v751_v18 = vadd.f32 %v2202_v30, %v712_v62  ;;  %v674_v33 = vmul.f32 %v1502_v11, %v2053_v59 }
 0x188   : > { %1515 = vrsqrt.f32 %v629_v1  ;;  %v598_v35 = vmul.f32 0.0078125, %v557_v45  ;;  %v583_v36 = vmul.f32 0.0078125, %v527_v27  ;;  %1051 = vmatmul.mubr.f32.vlgmr.msra.gmra.mxu1 %v766_v51  ;;  %v728_v29 = vmul.f32 %v2199_v12, %v689_v5 }
 0x189   : > { %v1504_v40 = vpop.eup %1503  ;;  %1517 = vrsqrt.f32 %v614_v2  ;;  %961 = vmatmul.mubr.f32.gmra.mxu0 %v751_v18  ;;  %1056 = vmatprep.mubr.f32.mxu1 %v1730_v6  ;;  %v713_v20 = vmul.f32 %v2199_v12, %v674_v33 }
 0x18a   : > { %v1506_v52 = vpop.eup %1505  ;;  %v630_v41 = vadd.f32 1e-05, %v598_v35  ;;  %v615_v42 = vadd.f32 1e-05, %v583_v36  ;;  %966 = vmatprep.mubr.f32.mxu0 %v1730_v6  ;;  %v767_v59 = vadd.f32 %v2202_v30, %v728_v29  ;;  %v690_v46 = vmul.f32 %v1504_v40, %v2056_v60 }
 0x18b   : > { %v559_v14 = vpop.xlane.xlu1 %558  ;;  %v529_v31 = vpop.xlane.xlu0 %528  ;;  %v752_v47 = vadd.f32 %v2202_v30, %v713_v20  ;;  %v675_v8 = vmul.f32 %v1506_v52, %v2063_v3 }
 0x18c   : > { %1519 = vrsqrt.f32 %v630_v41  ;;  %v599_v49 = vmul.f32 0.0078125, %v559_v14  ;;  %v584_v53 = vmul.f32 0.0078125, %v529_v31  ;;  %1057 = vmatmul.mubr.f32.gmra.mxu1 %v767_v59  ;;  %v729_v54 = vmul.f32 %v2199_v12, %v690_v46 }
 0x18d   : > { %v1508_v55 = vpop.eup %1507  ;;  %1521 = vrsqrt.f32 %v615_v42  ;;  %967 = vmatmul.mubr.f32.gmra.mxu0 %v752_v47  ;;  %1062 = vmatprep.mubr.f32.mxu1 %v1730_v6  ;;  %v714_v44 = vmul.f32 %v2199_v12, %v675_v8 }
 0x18e   : > { %v1510_v60 = vpop.eup %1509  ;;  %v631_v56 = vadd.f32 1e-05, %v599_v49  ;;  %v616_v57 = vadd.f32 1e-05, %v584_v53  ;;  %972 = vmatprep.mubr.f32.mxu0 %v1730_v6  ;;  %v768_v3 = vadd.f32 %v2202_v30, %v729_v54  ;;  %v691_v16 = vmul.f32 %v1508_v55, %v2066_v4 }
 0x18f   : > { %v561_v58 = vpop.xlane.xlu1 %560  ;;  %v531_v25 = vpop.xlane.xlu0 %530  ;;  %v753_v62 = vadd.f32 %v2202_v30, %v714_v44  ;;  %v676_v11 = vmul.f32 %v1510_v60, %v2073_v7 }
 0x190   : > { %1523 = vrsqrt.f32 %v631_v56  ;;  %v600_v1 = vmul.f32 0.0078125, %v561_v58  ;;  %v585_v2 = vmul.f32 0.0078125, %v531_v25  ;;  %1063 = vmatmul.mubr.f32.gmra.mxu1 %v768_v3  ;;  %v730_v51 = vmul.f32 %v2199_v12, %v691_v16 }
 0x191   : > { %v1512_v5 = vpop.eup %1511  ;;  %1525 = vrsqrt.f32 %v616_v57  ;;  %973 = vmatmul.mubr.f32.gmra.mxu0 %v753_v62  ;;  %1068 = vmatprep.mubr.f32.mxu1 %v1730_v6  ;;  %v715_v45 = vmul.f32 %v2199_v12, %v676_v11 }
 0x192   : > { %v1514_v4 = vpop.eup %1513  ;;  %v632_v27 = vadd.f32 1e-05, %v600_v1  ;;  %v617_v18 = vadd.f32 1e-05, %v585_v2  ;;  %978 = vmatprep.mubr.f32.mxu0 %v1730_v6  ;;  %v769_v7 = vadd.f32 %v2202_v30, %v730_v51  ;;  %v692_v33 = vmul.f32 %v1512_v5, %v2076_v39 }
 0x193   : > { %v563_v35 = vpop.xlane.xlu1 %562  ;;  %v533_v36 = vpop.xlane.xlu0 %532  ;;  %v754_v29 = vadd.f32 %v2202_v30, %v715_v45  ;;  %v677_v40 = vmul.f32 %v1514_v4, %v2083_v9 }
 0x194   : > { %1527 = vrsqrt.f32 %v632_v27  ;;  %v601_v20 = vmul.f32 0.0078125, %v563_v35  ;;  %v586_v52 = vmul.f32 0.0078125, %v533_v36  ;;  %1069 = vmatmul.mubr.f32.gmra.mxu1 %v769_v7  ;;  %v731_v41 = vmul.f32 %v2199_v12, %v692_v33 }
 0x195   : > { %v1516_v42 = vpop.eup %1515  ;;  %1529 = vrsqrt.f32 %v617_v18  ;;  %979 = vmatmul.mubr.f32.gmra.mxu0 %v754_v29  ;;  %1074 = vmatprep.mubr.f32.mxu1 %v1730_v6  ;;  %v716_v59 = vmul.f32 %v2199_v12, %v677_v40 }
 0x196   : > { %v1518_v39 = vpop.eup %1517  ;;  %v633_v46 = vadd.f32 1e-05, %v601_v20  ;;  %v618_v14 = vadd.f32 1e-05, %v586_v52  ;;  %984 = vmatprep.mubr.f32.mxu0 %v1730_v6  ;;  %v770_v9 = vadd.f32 %v2202_v30, %v731_v41  ;;  %v693_v31 = vmul.f32 %v1516_v42, %v2086_v50 }
 0x197   : > { %v565_v47 = vpop.xlane.xlu1 %564  ;;  %v535_v8 = vpop.xlane.xlu0 %534  ;;  %v755_v49 = vadd.f32 %v2202_v30, %v716_v59  ;;  %v678_v53 = vmul.f32 %v1518_v39, %v2093_v63 }
 0x198   : > { %1531 = vrsqrt.f32 %v633_v46  ;;  %v602_v54 = vmul.f32 0.0078125, %v565_v47  ;;  %v587_v55 = vmul.f32 0.0078125, %v535_v8  ;;  %1075 = vmatmul.mubr.f32.gmra.mxu1 %v770_v9  ;;  %v732_v44 = vmul.f32 %v2199_v12, %v693_v31 }
 0x199   : > { %v1520_v60 = vpop.eup %1519  ;;  %1533 = vrsqrt.f32 %v618_v14  ;;  %985 = vmatmul.mubr.f32.gmra.mxu0 %v755_v49  ;;  %1080 = vmatprep.mubr.f32.mxu1 %v1730_v6  ;;  %v717_v56 = vmul.f32 %v2199_v12, %v678_v53 }
 0x19a   : > { %v1522_v50 = vpop.eup %1521  ;;  %v634_v57 = vadd.f32 1e-05, %v602_v54  ;;  %v619_v3 = vadd.f32 1e-05, %v587_v55  ;;  %990 = vmatprep.mubr.f32.mxu0 %v1730_v6  ;;  %v771_v63 = vadd.f32 %v2202_v30, %v732_v44  ;;  %v694_v16 = vmul.f32 %v1520_v60, %v2096_v0 }
 0x19b   : > { %v567_v58 = vpop.xlane.xlu1 %566  ;;  %v537_v25 = vpop.xlane.xlu0 %536  ;;  %v756_v62 = vadd.f32 %v2202_v30, %v717_v56  ;;  %v679_v11 = vmul.f32 %v1522_v50, %v2103_v13 }
 0x19c   : > { %1535 = vrsqrt.f32 %v634_v57  ;;  %v603_v1 = vmul.f32 0.0078125, %v567_v58  ;;  %v588_v2 = vmul.f32 0.0078125, %v537_v25  ;;  %1081 = vmatmul.mubr.f32.gmra.mxu1 %v771_v63  ;;  %v733_v51 = vmul.f32 %v2199_v12, %v694_v16 }
 0x19d   : > { %v1524_v5 = vpop.eup %1523  ;;  %1537 = vrsqrt.f32 %v619_v3  ;;  %991 = vmatmul.mubr.f32.gmra.mxu0 %v756_v62  ;;  %1086 = vmatprep.mubr.f32.mxu1 %v1730_v6  ;;  %v718_v45 = vmul.f32 %v2199_v12, %v679_v11 }
 0x19e   : > { %v1526_v0 = vpop.eup %1525  ;;  %v635_v4 = vadd.f32 1e-05, %v603_v1  ;;  %v620_v27 = vadd.f32 1e-05, %v588_v2  ;;  %996 = vmatprep.mubr.f32.mxu0 %v1730_v6  ;;  %v772_v13 = vadd.f32 %v2202_v30, %v733_v51  ;;  %v695_v18 = vmul.f32 %v1524_v5, %v2106_v37 }
 0x19f   : > { %v569_v7 = vpop.xlane.xlu1 %568  ;;  %v539_v33 = vpop.xlane.xlu0 %538  ;;  %v757_v35 = vadd.f32 %v2202_v30, %v718_v45  ;;  %v680_v36 = vmul.f32 %v1526_v0, %v2113_v15 }
 0x1a0   : > { %1539 = vrsqrt.f32 %v635_v4  ;;  %v604_v29 = vmul.f32 0.0078125, %v569_v7  ;;  %v589_v40 = vmul.f32 0.0078125, %v539_v33  ;;  %1087 = vmatmul.mubr.f32.gmra.mxu1 %v772_v13  ;;  %v734_v20 = vmul.f32 %v2199_v12, %v695_v18 }
 0x1a1   : > { %v1528_v52 = vpop.eup %1527  ;;  %1541 = vrsqrt.f32 %v620_v27  ;;  %997 = vmatmul.mubr.f32.gmra.mxu0 %v757_v35  ;;  %1092 = vmatprep.mubr.f32.mxu1 %v1730_v6  ;;  %v719_v41 = vmul.f32 %v2199_v12, %v680_v36 }
 0x1a2   : > { %v1530_v37 = vpop.eup %1529  ;;  %v636_v42 = vadd.f32 1e-05, %v604_v29  ;;  %v621_v59 = vadd.f32 1e-05, %v589_v40  ;;  %1002 = vmatprep.mubr.f32.mxu0 %v1730_v6  ;;  %v773_v15 = vadd.f32 %v2202_v30, %v734_v20  ;;  %v696_v39 = vmul.f32 %v1528_v52, %v2116_v48 }
 0x1a3   : > { %v571_v46 = vpop.xlane.xlu1 %570  ;;  %v541_v14 = vpop.xlane.xlu0 %540  ;;  %v758_v9 = vadd.f32 %v2202_v30, %v719_v41  ;;  %v681_v31 = vmul.f32 %v1530_v37, %v2123_v17 }
 0x1a4   : > { %1543 = vrsqrt.f32 %v636_v42  ;;  %v605_v47 = vmul.f32 0.0078125, %v571_v46  ;;  %v590_v8 = vmul.f32 0.0078125, %v541_v14  ;;  %1093 = vmatmul.mubr.f32.gmra.mxu1 %v773_v15  ;;  %v735_v49 = vmul.f32 %v2199_v12, %v696_v39 }
 0x1a5   : > { %v1532_v53 = vpop.eup %1531  ;;  %1545 = vrsqrt.f32 %v621_v59  ;;  %1003 = vmatmul.mubr.f32.gmra.mxu0 %v758_v9  ;;  %1098 = vmatprep.mubr.f32.mxu1 %v1730_v6  ;;  %v720_v54 = vmul.f32 %v2199_v12, %v681_v31 }
 0x1a6   : > { %v1534_v48 = vpop.eup %1533  ;;  %v637_v55 = vadd.f32 1e-05, %v605_v47  ;;  %v622_v44 = vadd.f32 1e-05, %v590_v8  ;;  %1008 = vmatprep.mubr.f32.mxu0 %v1730_v6  ;;  %v774_v17 = vadd.f32 %v2202_v30, %v735_v49  ;;  %v697_v60 = vmul.f32 %v1532_v53, %v2126_v61 }
 0x1a7   : > { %v573_v56 = vpop.xlane.xlu1 %572  ;;  %v543_v50 = vpop.xlane.xlu0 %542  ;;  %v759_v57 = vadd.f32 %v2202_v30, %v720_v54  ;;  %v682_v3 = vmul.f32 %v1534_v48, %v2133_v19 }
 0x1a8   : > { %1547 = vrsqrt.f32 %v637_v55  ;;  %v606_v63 = vmul.f32 0.0078125, %v573_v56  ;;  %v591_v16 = vmul.f32 0.0078125, %v543_v50  ;;  %1099 = vmatmul.mubr.f32.gmra.mxu1 %v774_v17  ;;  %v736_v58 = vmul.f32 %v2199_v12, %v697_v60 }
 0x1a9   : > { %v1536_v25 = vpop.eup %1535  ;;  %1549 = vrsqrt.f32 %v622_v44  ;;  %1009 = vmatmul.mubr.f32.gmra.mxu0 %v759_v57  ;;  %1104 = vmatprep.mubr.f32.mxu1 %v1730_v6  ;;  %v721_v62 = vmul.f32 %v2199_v12, %v682_v3  ;;  %v880_v60 = vlaneseq  ;;  %v878_v57 = vld [vmem:[%s2526_s4] sm:$0x3] }
 0x1aa   : > { %v1538_v61 = vpop.eup %1537  ;;  %v638_v11 = vadd.f32 1e-05, %v606_v63  ;;  %v623_v1 = vadd.f32 1e-05, %v591_v16  ;;  %1014 = vmatprep.mubr.f32.mxu0 %v1730_v6  ;;  %v775_v19 = vadd.f32 %v2202_v30, %v736_v58  ;;  %v698_v2 = vmul.f32 %v1536_v25, %v2136_v34 }
 0x1ab   : > { %v575_v51 = vpop.xlane.xlu1 %574  ;;  %v760_v5 = vadd.f32 %v2202_v30, %v721_v62  ;;  %v683_v45 = vmul.f32 %v1538_v61, %v2144_v21  ;;  %v881_v56 = vshrl.u32 %v880_v60, 7 }
 0x1ac   : > { %1551 = vrsqrt.f32 %v638_v11  ;;  %v607_v0 = vmul.f32 0.0078125, %v575_v51  ;;  %1105 = vmatmul.mubr.f32.gmra.mxu1 %v775_v19  ;;  %v737_v4 = vmul.f32 %v2199_v12, %v698_v2 }
 0x1ad   : > { %v1540_v27 = vpop.eup %1539  ;;  %1553 = vrsqrt.f32 %v623_v1  ;;  %1015 = vmatmul.mubr.f32.gmra.mxu0 %v760_v5  ;;  %1110 = vmatprep.mubr.f32.mxu1 %v1730_v6  ;;  %v722_v13 = vmul.f32 %v2199_v12, %v683_v45  ;;  %v882_v50 = vsub.s32 0, %v881_v56  ;;  %v886_v3 = vsub.s32 1, %v881_v56 }
 0x1ae   : > { %v1542_v18 = vpop.eup %1541  ;;  %v639_v7 = vadd.f32 1e-05, %v607_v0  ;;  %1020 = vmatprep.mubr.f32.mxu0 %v1730_v6  ;;  %v776_v34 = vadd.f32 %v2202_v30, %v737_v4  ;;  %v699_v21 = vmul.f32 %v1540_v27, %v2147_v43 }
 0x1af   : > { %v761_v33 = vadd.f32 %v2202_v30, %v722_v13  ;;  %v684_v35 = vmul.f32 %v1542_v18, %v2155_v22  ;;  %v2335_v63 = vrot.slane %v878_v57, %v886_v3 }
 0x1b0   : > { %1555 = vrsqrt.f32 %v639_v7  ;;  %1111 = vmatmul.mubr.f32.gmra.mxu1 %v776_v34  ;;  %v738_v36 = vmul.f32 %v2199_v12, %v699_v21 }
 0x1b1   : > { %v1544_v29 = vpop.eup %1543  ;;  %1021 = vmatmul.mubr.f32.gmra.mxu0 %v761_v33  ;;  %1116 = vmatprep.mubr.f32.mxu1 %v1730_v6  ;;  %v723_v40 = vmul.f32 %v2199_v12, %v684_v35 }
 0x1b2   : > { %v1546_v20 = vpop.eup %1545  ;;  %1026 = vmatprep.mubr.f32.mxu0 %v1730_v6  ;;  %v777_v52 = vadd.f32 %v2202_v30, %v738_v36  ;;  %v700_v43 = vmul.f32 %v1544_v29, %v2158_v23 }
 0x1b3   : > { %v762_v41 = vadd.f32 %v2202_v30, %v723_v40  ;;  %v685_v22 = vmul.f32 %v1546_v20, %v2165_v10 }
 0x1b4   : > { %1117 = vmatmul.mubr.f32.gmra.mxu1 %v777_v52  ;;  %v739_v37 = vmul.f32 %v2199_v12, %v700_v43 }
 0x1b5   : > { %v1548_v42 = vpop.eup %1547  ;;  %1027 = vmatmul.mubr.f32.gmra.mxu0 %v762_v41  ;;  %1122 = vmatprep.mubr.f32.mxu1 %v1730_v6  ;;  %v724_v59 = vmul.f32 %v2199_v12, %v685_v22 }
 0x1b6   : > { %v1550_v15 = vpop.eup %1549  ;;  %1032 = vmatprep.mubr.f32.mxu0 %v1730_v6  ;;  %v778_v39 = vadd.f32 %v2202_v30, %v739_v37  ;;  %v701_v23 = vmul.f32 %v1548_v42, %v2168_v24 }
 0x1b7   : > { %v763_v46 = vadd.f32 %v2202_v30, %v724_v59  ;;  %v686_v10 = vmul.f32 %v1550_v15, %v2175_v32 }
 0x1b8   : > { %1123 = vmatmul.mubr.f32.gmra.mxu1 %v778_v39  ;;  %v740_v14 = vmul.f32 %v2199_v12, %v701_v23 }
 0x1b9   : > { %v1552_v9 = vpop.eup %1551  ;;  %1033 = vmatmul.mubr.f32.gmra.mxu0 %v763_v46  ;;  %1128 = vmatprep.mubr.f32.mxu1 %v1730_v6  ;;  %v725_v31 = vmul.f32 %v2199_v12, %v686_v10 }
 0x1ba   : > { %v1554_v47 = vpop.eup %1553  ;;  %1038 = vmatprep.mubr.f32.mxu0 %v1730_v6  ;;  %v779_v8 = vadd.f32 %v2202_v30, %v740_v14  ;;  %v702_v24 = vmul.f32 %v1552_v9, %v2178_v26 }
 0x1bb   : > { %v764_v49 = vadd.f32 %v2202_v30, %v725_v31  ;;  %v687_v32 = vmul.f32 %v1554_v47, %v2185_v38 }
 0x1bc   : > { %1129 = vmatmul.mubr.f32.gmra.mxu1 %v779_v8  ;;  %v741_v53 = vmul.f32 %v2199_v12, %v702_v24 }
 0x1bd   : > { %v1556_v54 = vpop.eup %1555  ;;  %1039 = vmatmul.mubr.f32.gmra.mxu0 %v764_v49  ;;  %1134 = vmatprep.mubr.f32.mxu1 %v1730_v6  ;;  %v726_v48 = vmul.f32 %v2199_v12, %v687_v32 }
 0x1be   : > { %1044 = vmatprep.mubr.f32.mxu0 %v1730_v6  ;;  %v780_v55 = vadd.f32 %v2202_v30, %v741_v53  ;;  %v703_v26 = vmul.f32 %v1556_v54, %v2188_v28  ;;  %v2333_v28 = vrot.slane %v878_v57, %v882_v50 }
 0x1bf   : > { %v765_v44 = vadd.f32 %v2202_v30, %v726_v48 }
 0x1c0   : > { %1135 = vmatmul.mubr.f32.gmra.mxu1 %v780_v55  ;;  %v742_v38 = vmul.f32 %v2199_v12, %v703_v26 }
 0x1c1   : > { %1045 = vmatmul.mubr.f32.gmra.mxu0 %v765_v44  ;;  %1140 = vmatprep.mubr.f32.mxu1 %v1730_v6 }
 0x1c2   : > { %v781_v17 = vadd.f32 %v2202_v30, %v742_v38 }
 0x1c4   : > { %1141 = vmatmul.mubr.f32.gmra.mxu1 %v781_v17 }
 0x244   : > { %v956_v12 = vpop.f32.mrf.mxu0 }
 0x245   : > { %v957_v16 = vadd.f32 %v956_v12, %v2333_v28 }
 0x246   : > { %v958_v6 = vpop.f32.mrf.mxu0 }
 0x247   : > { %1147 = vst [vmem:[%s2338_s10] sm:$0xff] %v957_v16  ;;  %v959_v30 = vadd.f32 %v958_v6, %v2335_v63 }
 0x248   : > { %v1052_v58 = vpop.f32.mrf.mxu1 }
 0x249   : > { %1148 = vst [vmem:[%s2338_s10 + $0x8] sm:$0xff] %v959_v30  ;;  %v962_v25 = vpop.f32.mrf.mxu0  ;;  %v1053_v62 = vadd.f32 %v1052_v58, %v2333_v28 }
 0x24a   : > { %v963_v61 = vadd.f32 %v962_v25, %v2333_v28  ;;  %v1054_v11 = vpop.f32.mrf.mxu1 }
 0x24b   : > { %1179 = vst [vmem:[%s2338_s10 + $0x100] sm:$0xff] %v1053_v62  ;;  %v964_v1 = vpop.f32.mrf.mxu0  ;;  %v1055_v19 = vadd.f32 %v1054_v11, %v2335_v63 }
 0x24c   : > { %1149 = vst [vmem:[%s2338_s10 + $0x10] sm:$0xff] %v963_v61  ;;  %v965_v2 = vadd.f32 %v964_v1, %v2335_v63  ;;  %v1058_v51 = vpop.f32.mrf.mxu1 }
 0x24d   : > { %1180 = vst [vmem:[%s2338_s10 + $0x108] sm:$0xff] %v1055_v19  ;;  %v968_v5 = vpop.f32.mrf.mxu0  ;;  %v1059_v45 = vadd.f32 %v1058_v51, %v2333_v28 }
 0x24e   : > { %1150 = vst [vmem:[%s2338_s10 + $0x18] sm:$0xff] %v965_v2  ;;  %v969_v0 = vadd.f32 %v968_v5, %v2333_v28  ;;  %v1060_v4 = vpop.f32.mrf.mxu1 }
 0x24f   : > { %1181 = vst [vmem:[%s2338_s10 + $0x110] sm:$0xff] %v1059_v45  ;;  %v970_v27 = vpop.f32.mrf.mxu0  ;;  %v1061_v13 = vadd.f32 %v1060_v4, %v2335_v63 }
 0x250   : > { %1151 = vst [vmem:[%s2338_s10 + $0x20] sm:$0xff] %v969_v0  ;;  %v971_v18 = vadd.f32 %v970_v27, %v2335_v63  ;;  %v1064_v7 = vpop.f32.mrf.mxu1 }
 0x251   : > { %1182 = vst [vmem:[%s2338_s10 + $0x118] sm:$0xff] %v1061_v13  ;;  %v974_v34 = vpop.f32.mrf.mxu0  ;;  %v1065_v21 = vadd.f32 %v1064_v7, %v2333_v28 }
 0x252   : > { %1152 = vst [vmem:[%s2338_s10 + $0x28] sm:$0xff] %v971_v18  ;;  %v975_v33 = vadd.f32 %v974_v34, %v2333_v28  ;;  %v1066_v35 = vpop.f32.mrf.mxu1 }
 0x253   : > { %1183 = vst [vmem:[%s2338_s10 + $0x120] sm:$0xff] %v1065_v21  ;;  %v976_v36 = vpop.f32.mrf.mxu0  ;;  %v1067_v29 = vadd.f32 %v1066_v35, %v2335_v63 }
 0x254   : > { %1153 = vst [vmem:[%s2338_s10 + $0x30] sm:$0xff] %v975_v33  ;;  %v977_v40 = vadd.f32 %v976_v36, %v2335_v63  ;;  %v1070_v20 = vpop.f32.mrf.mxu1 }
 0x255   : > { %1184 = vst [vmem:[%s2338_s10 + $0x128] sm:$0xff] %v1067_v29  ;;  %v980_v52 = vpop.f32.mrf.mxu0  ;;  %v1071_v43 = vadd.f32 %v1070_v20, %v2333_v28 }
 0x256   : > { %1154 = vst [vmem:[%s2338_s10 + $0x38] sm:$0xff] %v977_v40  ;;  %v981_v41 = vadd.f32 %v980_v52, %v2333_v28  ;;  %v1072_v22 = vpop.f32.mrf.mxu1 }
 0x257   : > { %1185 = vst [vmem:[%s2338_s10 + $0x130] sm:$0xff] %v1071_v43  ;;  %v982_v37 = vpop.f32.mrf.mxu0  ;;  %v1073_v42 = vadd.f32 %v1072_v22, %v2335_v63 }
 0x258   : > { %1155 = vst [vmem:[%s2338_s10 + $0x40] sm:$0xff] %v981_v41  ;;  %v983_v59 = vadd.f32 %v982_v37, %v2335_v63  ;;  %v1076_v15 = vpop.f32.mrf.mxu1 }
 0x259   : > { %1186 = vst [vmem:[%s2338_s10 + $0x138] sm:$0xff] %v1073_v42  ;;  %v986_v39 = vpop.f32.mrf.mxu0  ;;  %v1077_v23 = vadd.f32 %v1076_v15, %v2333_v28 }
 0x25a   : > { %1156 = vst [vmem:[%s2338_s10 + $0x48] sm:$0xff] %v983_v59  ;;  %v987_v46 = vadd.f32 %v986_v39, %v2333_v28  ;;  %v1078_v10 = vpop.f32.mrf.mxu1 }
 0x25b   : > { %1187 = vst [vmem:[%s2338_s10 + $0x140] sm:$0xff] %v1077_v23  ;;  %v988_v14 = vpop.f32.mrf.mxu0  ;;  %v1079_v9 = vadd.f32 %v1078_v10, %v2335_v63 }
 0x25c   : > { %1157 = vst [vmem:[%s2338_s10 + $0x50] sm:$0xff] %v987_v46  ;;  %v989_v31 = vadd.f32 %v988_v14, %v2335_v63  ;;  %v1082_v47 = vpop.f32.mrf.mxu1 }
 0x25d   : > { %1188 = vst [vmem:[%s2338_s10 + $0x148] sm:$0xff] %v1079_v9  ;;  %v992_v8 = vpop.f32.mrf.mxu0  ;;  %v1083_v24 = vadd.f32 %v1082_v47, %v2333_v28 }
 0x25e   : > { %1158 = vst [vmem:[%s2338_s10 + $0x58] sm:$0xff] %v989_v31  ;;  %v993_v49 = vadd.f32 %v992_v8, %v2333_v28  ;;  %v1084_v32 = vpop.f32.mrf.mxu1 }
 0x25f   : > { %1189 = vst [vmem:[%s2338_s10 + $0x150] sm:$0xff] %v1083_v24  ;;  %v994_v53 = vpop.f32.mrf.mxu0  ;;  %v1085_v54 = vadd.f32 %v1084_v32, %v2335_v63 }
 0x260   : > { %1159 = vst [vmem:[%s2338_s10 + $0x60] sm:$0xff] %v993_v49  ;;  %v995_v48 = vadd.f32 %v994_v53, %v2335_v63  ;;  %v1088_v55 = vpop.f32.mrf.mxu1 }
 0x261   : > { %1190 = vst [vmem:[%s2338_s10 + $0x158] sm:$0xff] %v1085_v54  ;;  %v998_v26 = vpop.f32.mrf.mxu0  ;;  %v1089_v44 = vadd.f32 %v1088_v55, %v2333_v28 }
 0x262   : > { %1160 = vst [vmem:[%s2338_s10 + $0x68] sm:$0xff] %v995_v48  ;;  %v999_v38 = vadd.f32 %v998_v26, %v2333_v28  ;;  %v1090_v17 = vpop.f32.mrf.mxu1 }
 0x263   : > { %1191 = vst [vmem:[%s2338_s10 + $0x160] sm:$0xff] %v1089_v44  ;;  %v1000_v60 = vpop.f32.mrf.mxu0  ;;  %v1091_v56 = vadd.f32 %v1090_v17, %v2335_v63 }
 0x264   : > { %1161 = vst [vmem:[%s2338_s10 + $0x70] sm:$0xff] %v999_v38  ;;  %v1001_v50 = vadd.f32 %v1000_v60, %v2335_v63  ;;  %v1094_v57 = vpop.f32.mrf.mxu1 }
 0x265   : > { %1192 = vst [vmem:[%s2338_s10 + $0x168] sm:$0xff] %v1091_v56  ;;  %v1004_v3 = vpop.f32.mrf.mxu0  ;;  %v1095_v12 = vadd.f32 %v1094_v57, %v2333_v28 }
 0x266   : > { %1162 = vst [vmem:[%s2338_s10 + $0x78] sm:$0xff] %v1001_v50  ;;  %v1005_v16 = vadd.f32 %v1004_v3, %v2333_v28  ;;  %v1096_v6 = vpop.f32.mrf.mxu1 }
 0x267   : > { %1193 = vst [vmem:[%s2338_s10 + $0x170] sm:$0xff] %v1095_v12  ;;  %v1006_v30 = vpop.f32.mrf.mxu0  ;;  %v1097_v58 = vadd.f32 %v1096_v6, %v2335_v63 }
 0x268   : > { %1163 = vst [vmem:[%s2338_s10 + $0x80] sm:$0xff] %v1005_v16  ;;  %v1007_v25 = vadd.f32 %v1006_v30, %v2335_v63  ;;  %v1100_v62 = vpop.f32.mrf.mxu1 }
 0x269   : > { %1194 = vst [vmem:[%s2338_s10 + $0x178] sm:$0xff] %v1097_v58  ;;  %v1010_v61 = vpop.f32.mrf.mxu0  ;;  %v1101_v11 = vadd.f32 %v1100_v62, %v2333_v28 }
 0x26a   : > { %1164 = vst [vmem:[%s2338_s10 + $0x88] sm:$0xff] %v1007_v25  ;;  %v1011_v1 = vadd.f32 %v1010_v61, %v2333_v28  ;;  %v1102_v19 = vpop.f32.mrf.mxu1 }
 0x26b   : > { %1195 = vst [vmem:[%s2338_s10 + $0x180] sm:$0xff] %v1101_v11  ;;  %v1012_v2 = vpop.f32.mrf.mxu0  ;;  %v1103_v51 = vadd.f32 %v1102_v19, %v2335_v63 }
 0x26c   : > { %1165 = vst [vmem:[%s2338_s10 + $0x90] sm:$0xff] %v1011_v1  ;;  %v1013_v5 = vadd.f32 %v1012_v2, %v2335_v63  ;;  %v1106_v45 = vpop.f32.mrf.mxu1 }
 0x26d   : > { %1196 = vst [vmem:[%s2338_s10 + $0x188] sm:$0xff] %v1103_v51  ;;  %v1016_v0 = vpop.f32.mrf.mxu0  ;;  %v1107_v4 = vadd.f32 %v1106_v45, %v2333_v28 }
 0x26e   : > { %1166 = vst [vmem:[%s2338_s10 + $0x98] sm:$0xff] %v1013_v5  ;;  %v1017_v27 = vadd.f32 %v1016_v0, %v2333_v28  ;;  %v1108_v13 = vpop.f32.mrf.mxu1 }
 0x26f   : > { %1197 = vst [vmem:[%s2338_s10 + $0x190] sm:$0xff] %v1107_v4  ;;  %v1018_v18 = vpop.f32.mrf.mxu0  ;;  %v1109_v7 = vadd.f32 %v1108_v13, %v2335_v63 }
 0x270   : > { %1167 = vst [vmem:[%s2338_s10 + $0xa0] sm:$0xff] %v1017_v27  ;;  %v1019_v34 = vadd.f32 %v1018_v18, %v2335_v63  ;;  %v1112_v21 = vpop.f32.mrf.mxu1 }
 0x271   : > { %1198 = vst [vmem:[%s2338_s10 + $0x198] sm:$0xff] %v1109_v7  ;;  %v1022_v33 = vpop.f32.mrf.mxu0  ;;  %v1113_v35 = vadd.f32 %v1112_v21, %v2333_v28 }
 0x272   : > { %1168 = vst [vmem:[%s2338_s10 + $0xa8] sm:$0xff] %v1019_v34  ;;  %v1023_v36 = vadd.f32 %v1022_v33, %v2333_v28  ;;  %v1114_v29 = vpop.f32.mrf.mxu1 }
 0x273   : > { %1199 = vst [vmem:[%s2338_s10 + $0x1a0] sm:$0xff] %v1113_v35  ;;  %v1024_v40 = vpop.f32.mrf.mxu0  ;;  %v1115_v20 = vadd.f32 %v1114_v29, %v2335_v63 }
 0x274   : > { %1169 = vst [vmem:[%s2338_s10 + $0xb0] sm:$0xff] %v1023_v36  ;;  %v1025_v52 = vadd.f32 %v1024_v40, %v2335_v63  ;;  %v1118_v43 = vpop.f32.mrf.mxu1 }
 0x275   : > { %1200 = vst [vmem:[%s2338_s10 + $0x1a8] sm:$0xff] %v1115_v20  ;;  %v1028_v41 = vpop.f32.mrf.mxu0  ;;  %v1119_v22 = vadd.f32 %v1118_v43, %v2333_v28 }
 0x276   : > { %1170 = vst [vmem:[%s2338_s10 + $0xb8] sm:$0xff] %v1025_v52  ;;  %v1029_v37 = vadd.f32 %v1028_v41, %v2333_v28  ;;  %v1120_v42 = vpop.f32.mrf.mxu1 }
 0x277   : > { %1201 = vst [vmem:[%s2338_s10 + $0x1b0] sm:$0xff] %v1119_v22  ;;  %v1030_v59 = vpop.f32.mrf.mxu0  ;;  %v1121_v15 = vadd.f32 %v1120_v42, %v2335_v63 }
 0x278   : > { %1171 = vst [vmem:[%s2338_s10 + $0xc0] sm:$0xff] %v1029_v37  ;;  %v1031_v39 = vadd.f32 %v1030_v59, %v2335_v63  ;;  %v1124_v23 = vpop.f32.mrf.mxu1 }
 0x279   : > { %1202 = vst [vmem:[%s2338_s10 + $0x1b8] sm:$0xff] %v1121_v15  ;;  %v1034_v46 = vpop.f32.mrf.mxu0  ;;  %v1125_v10 = vadd.f32 %v1124_v23, %v2333_v28 }
 0x27a   : > { %1172 = vst [vmem:[%s2338_s10 + $0xc8] sm:$0xff] %v1031_v39  ;;  %v1035_v14 = vadd.f32 %v1034_v46, %v2333_v28  ;;  %v1126_v9 = vpop.f32.mrf.mxu1 }
 0x27b   : > { %1203 = vst [vmem:[%s2338_s10 + $0x1c0] sm:$0xff] %v1125_v10  ;;  %v1036_v31 = vpop.f32.mrf.mxu0  ;;  %v1127_v47 = vadd.f32 %v1126_v9, %v2335_v63 }
 0x27c   : > { %1173 = vst [vmem:[%s2338_s10 + $0xd0] sm:$0xff] %v1035_v14  ;;  %v1037_v8 = vadd.f32 %v1036_v31, %v2335_v63  ;;  %v1130_v24 = vpop.f32.mrf.mxu1 }
 0x27d   : > { %1204 = vst [vmem:[%s2338_s10 + $0x1c8] sm:$0xff] %v1127_v47  ;;  %v1040_v49 = vpop.f32.mrf.mxu0  ;;  %v1131_v32 = vadd.f32 %v1130_v24, %v2333_v28 }
 0x27e   : > { %1174 = vst [vmem:[%s2338_s10 + $0xd8] sm:$0xff] %v1037_v8  ;;  %v1041_v53 = vadd.f32 %v1040_v49, %v2333_v28  ;;  %v1132_v54 = vpop.f32.mrf.mxu1 }
 0x27f   : > { %1205 = vst [vmem:[%s2338_s10 + $0x1d0] sm:$0xff] %v1131_v32  ;;  %v1042_v48 = vpop.f32.mrf.mxu0  ;;  %v1133_v55 = vadd.f32 %v1132_v54, %v2335_v63 }
 0x280   : > { %1175 = vst [vmem:[%s2338_s10 + $0xe0] sm:$0xff] %v1041_v53  ;;  %v1043_v26 = vadd.f32 %v1042_v48, %v2335_v63  ;;  %v1136_v44 = vpop.f32.mrf.mxu1 }
 0x281   : > { %1206 = vst [vmem:[%s2338_s10 + $0x1d8] sm:$0xff] %v1133_v55  ;;  %v1046_v38 = vpop.f32.mrf.mxu0  ;;  %v1137_v17 = vadd.f32 %v1136_v44, %v2333_v28 }
 0x282   : > { %1176 = vst [vmem:[%s2338_s10 + $0xe8] sm:$0xff] %v1043_v26  ;;  %v1047_v60 = vadd.f32 %v1046_v38, %v2333_v28  ;;  %v1138_v56 = vpop.f32.mrf.mxu1 }
 0x283   : > { %1207 = vst [vmem:[%s2338_s10 + $0x1e0] sm:$0xff] %v1137_v17  ;;  %v1048_v50 = vpop.f32.mrf.mxu0  ;;  %v1139_v57 = vadd.f32 %v1138_v56, %v2335_v63 }
 0x284   : > { %1177 = vst [vmem:[%s2338_s10 + $0xf0] sm:$0xff] %v1047_v60  ;;  %v1049_v3 = vadd.f32 %v1048_v50, %v2335_v63  ;;  %v1142_v12 = vpop.f32.mrf.mxu1 }
 0x285   : > { %1208 = vst [vmem:[%s2338_s10 + $0x1e8] sm:$0xff] %v1139_v57  ;;  %v1143_v16 = vadd.f32 %v1142_v12, %v2333_v28 }
 0x286   : > { %1178 = vst [vmem:[%s2338_s10 + $0xf8] sm:$0xff] %v1049_v3  ;;  %v1144_v6 = vpop.f32.mrf.mxu1 }
 0x287   : > { %1209 = vst [vmem:[%s2338_s10 + $0x1f0] sm:$0xff] %v1143_v16  ;;  %v1145_v30 = vadd.f32 %v1144_v6, %v2335_v63 }
 0x289   : > { %1210 = vst [vmem:[%s2338_s10 + $0x1f8] sm:$0xff] %v1145_v30 }
 0x28a   : > { %1650 = shalt.err (!%p1647_p2)
}
 0x28b   : > { %s1651_s13 = scalar_lea.hbm %s2469_s9, 8192  ;;  %s1655_s27 = scalar_lea.hbm %s2527_s5, 16384 }
 0x28c   : > { %p1652_p6 = scmp.ne.s32.totalorder %s2469_s9, %s1651_s13  ;;  %p1656_p0 = scmp.lt.s32.totalorder %s2469_s9, %s2527_s5 }
 0x28d   : > { %p1657_p10 = scmp.lt.s32.totalorder %s1655_s27, %s1651_s13 }
 0x28e   : > { %p1653_p11 = pnand %p1652_p6, %p2555_p7 }
 0x28f   : > { %p1658_p5 = por %p1657_p10, %p1656_p0 }
 0x290   : > { %p1654_p1 = pneg %p1653_p11 }
 0x292   : > { %p1659_p3 = pnand %p1658_p5, %p1654_p1 }
 0x294   : > { %1662 = shalt.err (!%p1659_p3)
}
 0x295   : > { %s1732_s7 = smov 256   ;;  %s1733_s10 = smov 16  }
 0x296   : > { %1413 = dma.vmem_to_hbm [thread:$0]  (%p2555_p7), %s2471_s12, 8192, %s2469_s9, %s1212_s21, %s1732_s7, %s1732_s7, %s1733_s10  }
 0x297 PF: > { %s2556_s24 = sld [smem:[#allocation14_spill]]  ;;  %s1243_s8 = sand.u32 1, %s1701_s18  }
 0x298   : > { %s2557_s28 = sld [smem:[#allocation13_spill]]  ;;  %s1244_s2 = scalar_lea.sflag [#allocation5], %s1243_s8 }
 0x29d   : > { %p2558_p8 = scmp.ne.s32.totalorder %s2556_s24, 0 }
 0x29e   : > { %p2559_p9 = scmp.ge.s32.totalorder %s2557_s28, 2 }
 0x2a0   : > { %p1427_p12 = pnand %p2559_p9, %p2558_p8 }
 0x2a2   : > { %p1428_p13 = pneg %p1427_p12 }
 0x2a4   : > { %1696 = dma.done.wait (%p1428_p13), %s1244_s2, 8192  }
 0x2a5   : > { %1698 = vsyncadd (%p1428_p13), %s1244_s2, 4294959104  ;;  %s22_s23 = sadd.s32 1, %s2557_s28   ;;  %s2560_s18 = smov %s1705_s19 }
 0x2a6   : > { %p19_p4 = scmp.ge.s32.totalorder %s22_s23, 4   ;;  %s2561_s19 = smov %s1709_s20 }
 0x2a7   : > { %s2562_s20 = smov %s1887_s15  ;;  %s2563_s21 = smov %s1717_s22 }
 0x2a8   : > { %s2564_s22 = smov %s2566_s14  ;;  %21 = sbr.rel (!%p19_p4) target bundleno = 9 (0x9), region = 101 }
 0x2ad   :  { %1249 = vsyncpa [#allocation4], 1 }
 0x2ae   :  { %1251 = vsyncpa [#allocation4 + $0x1], 1 }
 0x2af   :  { %1252 = vsyncpa [#allocation7], 1 }
 0x2b0   :  { %1253 = vsyncpa [#allocation5], 1 }
 0x2b1   :  { %1255 = vsyncpa [#allocation5 + $0x1], 1 }

</bundles_post_ra>
